<compile_context>
chip_gen: v6e
topology: v6e:2x2x1
jax: 0.10.0
libtpu: 0.0.40
codegen_flags: <defaults>
</compile_context>

<pallas_src>
import functools

import jax
import jax.numpy as jnp
from jax.experimental import pallas as pl
from jax.experimental.pallas import tpu as pltpu

_MIB = 1024 * 1024


def _round_up(x, m):
    return ((x + m - 1) // m) * m


def compute_hidden_dim(dim, multiple_of, ffn_dim_multiplier=None):
    hidden_dim = 4 * dim
    hidden_dim = int(2 * hidden_dim / 3)
    if ffn_dim_multiplier is not None:
        hidden_dim = int(ffn_dim_multiplier * hidden_dim)
    hidden_dim = multiple_of * ((hidden_dim + multiple_of - 1) // multiple_of)
    return hidden_dim


def _vmem_capacity_bytes():
    try:
        return int(pltpu.get_tpu_info().vmem_capacity_bytes)
    except Exception:
        return 128 * _MIB  # v5e/v6e; v7x reports 64 MiB per TensorCore.


def _tile_vmem_bytes(tm, th, dim, out_bytes):
    """Estimated VMEM for one (tm, th) choice: double-buffered in/out blocks,
    f32 accumulator scratch, and the h / gated intermediates Mosaic materializes."""
    x_tile = tm * dim * 2             # bf16 activations
    w13_tile = dim * (2 * th) * 2     # bf16 fused [W1^T | W3^T] tile
    w2t_tile = th * dim * 2           # bf16 W2^T tile
    out_tile = tm * dim * out_bytes
    acc = tm * dim * 4                # f32 accumulator (single buffer)
    interm = tm * (2 * th) * 4 + tm * th * 4 + tm * th * 2
    headroom = 4 * _MIB
    return 2 * (x_tile + w13_tile + w2t_tile + out_tile) + acc + interm + headroom


def _tm_candidates(M):
    m_cap = _round_up(M, 16)  # bf16 sublane packing: multiples of 16
    return sorted(
        {min(t, m_cap) for t in (1024, 768, 512, 384, 256, 128, 64, 32, 16)},
        reverse=True,
    )


def select_ffn_tiles(M, dim, hidden, out_bytes=2, vmem_cap=None):
    """Pick (tm, th).  Maximize tm first (AI = tm FLOP / weight byte), then the
    largest hidden tile that still fits the VMEM budget of this chip."""
    if vmem_cap is None:
        vmem_cap = _vmem_capacity_bytes()
    budget = int(vmem_cap * 0.80)
    th_cands = [t for t in range(128, min(hidden, 1024) + 1, 128) if hidden % t == 0]
    if not th_cands:
        # TODO(synk): pad hidden to a multiple of 128 instead of a full-width tile.
        th_cands = [hidden]
    th_cands = sorted(th_cands, reverse=True)
    for tm in _tm_candidates(M):
        for th in th_cands:
            if _tile_vmem_bytes(tm, th, dim, out_bytes) <= budget:
                return tm, th
    return _tm_candidates(M)[-1], th_cands[-1]


def prepare_ffn_weights(w1, w2, w3, *, th, compute_dtype=jnp.bfloat16):
    """One-time weight prep (call at init, NOT per forward pass).

    w1, w3: (hidden, dim)  PyTorch nn.Linear layout (out_features, in_features)
    w2:     (dim, hidden)
    Returns:
      w13: (nk, dim, 2*th) bf16 — hidden-tile k is a contiguous [W1^T | W3^T] slab
      w2t: (nk, th, dim)   bf16 — hidden-tile k of W2^T, contiguous per tile
    """
    hidden, dim = w1.shape
    assert w3.shape == (hidden, dim) and w2.shape == (dim, hidden)
    assert hidden % th == 0
    nk = hidden // th
    w1t = jnp.asarray(w1, compute_dtype).T  # (dim, hidden)
    w3t = jnp.asarray(w3, compute_dtype).T  # (dim, hidden)
    w13 = jnp.concatenate(
        [w1t.reshape(dim, nk, th), w3t.reshape(dim, nk, th)], axis=-1
    ).transpose(1, 0, 2)                    # (nk, dim, 2*th), contiguous per k
    w2t = jnp.asarray(w2, compute_dtype).T.reshape(nk, th, dim)
    return w13, w2t


def _ffn_kernel(x_ref, w13_ref, w2t_ref, o_ref, acc_ref, *, th):
    # x_ref:   (tm, dim)     bf16
    # w13_ref: (dim, 2*th)   bf16   (leading tile axis squeezed by BlockSpec)
    # w2t_ref: (th, dim)     bf16
    # o_ref:   (tm, dim)     out dtype
    # acc_ref: (tm, dim)     f32 accumulator, persists across hidden tiles
    k = pl.program_id(1)

    @pl.when(k == 0)
    def _init():
        acc_ref[...] = jnp.zeros_like(acc_ref)

    x = x_ref[...]
    # Fused W1/W3 up-projection on the MXU (bf16 in, f32 accumulate).
    h = jnp.dot(x, w13_ref[...], preferred_element_type=jnp.float32)  # (tm, 2*th)
    h1 = h[:, :th]
    h3 = h[:, th:]
    # SwiGLU gating in f32 (EUP sigmoid + VPU mults); bf16 only to feed the MXU.
    gated = (h1 * jax.nn.sigmoid(h1) * h3).astype(w2t_ref.dtype)
    # Partial down-projection; reduce over hidden tiles into the f32 accumulator.
    acc_ref[...] += jnp.dot(gated, w2t_ref[...], preferred_element_type=jnp.float32)

    @pl.when(k == pl.num_programs(1) - 1)
    def _finish():
        o_ref[...] = acc_ref[...].astype(o_ref.dtype)


def feed_forward(x, w13, w2t, *, tm=None, compute_dtype=jnp.bfloat16):
    """x: (batch, seq, dim); w13/w2t from prepare_ffn_weights (pre-tiled)."""
    batch, seq, dim = x.shape
    nk, th, dim2 = w2t.shape
    assert dim2 == dim
    hidden = nk * th
    assert w13.shape == (nk, dim, 2 * th)

    M = batch * seq
    out_dtype = x.dtype
    out_bytes = jnp.dtype(out_dtype).itemsize
    vmem_cap = _vmem_capacity_bytes()

    # Pick the largest token tile that fits the VMEM budget for this th.
    if tm is None:
        budget = int(vmem_cap * 0.80)
        tm = 16
        for cand in _tm_candidates(M):
            if _tile_vmem_bytes(cand, th, dim, out_bytes) <= budget:
                tm = cand
                break
    tm_eff = min(tm, _round_up(M, 16))
    M_pad = _round_up(M, tm_eff)

    x2d = x.reshape(M, dim).astype(compute_dtype)
    if M_pad != M:
        x2d = jnp.pad(x2d, ((0, M_pad - M), (0, 0)))

    n_tok = M_pad // tm_eff
    grid = (n_tok, nk)
    # TODO(synk): for single-token-tile decode on v7x (2 TCs), split the hidden
    # reduction across cores (two partial accumulators) so the second core isn't idle.

    # VMEM limit derived from the actual tile footprint (+ headroom), not a blanket cap.
    need = _tile_vmem_bytes(tm_eff, th, dim, out_bytes)
    vmem_limit = int(max(32 * _MIB, min(vmem_cap * 0.92, need + 8 * _MIB)))
    vmem_limit = min(vmem_limit, vmem_cap)

    # Cost hint so XLA schedules surrounding ops around this long custom call.
    weight_bytes = (w13.size * w13.dtype.itemsize + w2t.size * w2t.dtype.itemsize)
    cost = pl.CostEstimate(
        flops=6 * M_pad * dim * hidden,
        transcendentals=M_pad * hidden,
        bytes_accessed=weight_bytes * n_tok + x2d.size * 2 + M_pad * dim * out_bytes,
    )

    kernel = functools.partial(_ffn_kernel, th=th)

    out2d = pl.pallas_call(
        kernel,
        out_shape=jax.ShapeDtypeStruct((M_pad, dim), out_dtype),
        grid_spec=pltpu.PrefetchScalarGridSpec(
            num_scalar_prefetch=0,
            grid=grid,
            in_specs=[
                pl.BlockSpec((tm_eff, dim), lambda i, k: (i, 0)),
                # Pre-tiled weights: one contiguous DMA per hidden tile.
                pl.BlockSpec((None, dim, 2 * th), lambda i, k: (k, 0, 0)),
                pl.BlockSpec((None, th, dim), lambda i, k: (k, 0, 0)),
            ],
            out_specs=pl.BlockSpec((tm_eff, dim), lambda i, k: (i, 0)),
            scratch_shapes=[pltpu.VMEM((tm_eff, dim), jnp.float32)],
        ),
        compiler_params=pltpu.CompilerParams(
            dimension_semantics=("parallel", "arbitrary"),
            vmem_limit_bytes=vmem_limit,
        ),
        cost_estimate=cost,
    )(x2d, w13, w2t)

    if M_pad != M:
        out2d = out2d[:M]
    return out2d.reshape(batch, seq, dim)


if __name__ == "__main__":
    # Small ModelArgs-consistent config.
    dim = 256
    multiple_of = 256
    hidden = compute_hidden_dim(dim, multiple_of)  # 768
    batch, seq = 2, 8

    key = jax.random.PRNGKey(0)
    kx, k1, k2, k3 = jax.random.split(key, 4)

    x = jax.random.normal(kx, (batch, seq, dim), dtype=jnp.float32)
    # nn.Linear weights: (out_features, in_features), no bias.
    w1 = jax.random.normal(k1, (hidden, dim), dtype=jnp.float32) * (dim ** -0.5)
    w2 = jax.random.normal(k2, (dim, hidden), dtype=jnp.float32) * (hidden ** -0.5)
    w3 = jax.random.normal(k3, (hidden, dim), dtype=jnp.float32) * (dim ** -0.5)

    # Budget-driven tile selection for this chip, then one-time weight prep.
    tm, th = select_ffn_tiles(batch * seq, dim, hidden, out_bytes=x.dtype.itemsize)
    w13, w2t = prepare_ffn_weights(w1, w2, w3, th=th)

    out = feed_forward(x, w13, w2t, tm=tm)
    jax.block_until_ready(out)

    # Reference in plain JAX with matched bf16 rounding (f32 accumulation).
    f32 = jnp.float32
    xb = x.astype(jnp.bfloat16).astype(f32)
    w1b = w1.astype(jnp.bfloat16).astype(f32)
    w2b = w2.astype(jnp.bfloat16).astype(f32)
    w3b = w3.astype(jnp.bfloat16).astype(f32)
    h1 = xb @ w1b.T
    h3 = xb @ w3b.T
    gated = (h1 * jax.nn.sigmoid(h1) * h3).astype(jnp.bfloat16).astype(f32)
    ref = gated @ w2b.T

    assert out.shape == (batch, seq, dim)
    assert out.dtype == x.dtype
    max_err = float(jnp.max(jnp.abs(out - ref)))
    assert jnp.allclose(out, ref, atol=2e-2, rtol=2e-2), f"max abs err {max_err}"

    print("KERNEL_OK")
</pallas_src>

<mosaic_0001>
module attributes {stable_mosaic.version = 11 : i64} {
  func.func @_ffn_kernel(%arg0: i32, %arg1: i32, %arg2: memref<16x256xbf16, #tpu.memory_space<vmem>>, %arg3: memref<1x256x1536xbf16, #tpu.memory_space<vmem>>, %arg4: memref<1x768x256xbf16, #tpu.memory_space<vmem>>, %arg5: memref<16x256xf32, #tpu.memory_space<vmem>>, %arg6: memref<16x256xf32, #tpu.memory_space<vmem>>) attributes {dimension_semantics = [#tpu.dimension_semantics<parallel>, #tpu.dimension_semantics<arbitrary>], iteration_bounds = array<i64: 1, 1>, scalar_prefetch = 0 : i64, scratch_operands = 1 : i64, tpu.core_type = #tpu.core_type<tc>, window_params = [{transform_indices = @transform_0, window_bounds = array<i64: 16, 256>}, {transform_indices = @transform_1, window_bounds = array<i64: 1, 256, 1536>}, {transform_indices = @transform_2, window_bounds = array<i64: 1, 768, 256>}, {transform_indices = @transform_3, window_bounds = array<i64: 16, 256>}]} {
    %c0_i32 = arith.constant 0 : i32
    %0 = arith.cmpi eq, %arg1, %c0_i32 : i32
    %1 = arith.extui %0 : i1 to i32
    %c0_i32_0 = arith.constant 0 : i32
    %2 = arith.cmpi ne, %1, %c0_i32_0 : i32
    scf.if %2 {
      %cst_16 = arith.constant 0.000000e+00 : f32
      %26 = vector.broadcast %cst_16 : f32 to vector<16x256xf32>
      %c0_17 = arith.constant 0 : index
      %c0_18 = arith.constant 0 : index
      %27 = vector.load %arg6[%c0_17, %c0_18] : memref<16x256xf32, #tpu.memory_space<vmem>>, vector<16x256xf32>
      tpu.vector_store %arg6[%c0_17, %c0_18], %26 {strides = array<i32>} : memref<16x256xf32, #tpu.memory_space<vmem>>, vector<16x256xf32>,
    } else {
    }
    %c0 = arith.constant 0 : index
    %c0_1 = arith.constant 0 : index
    %3 = vector.load %arg2[%c0, %c0_1] : memref<16x256xbf16, #tpu.memory_space<vmem>>, vector<16x256xbf16>
    %c0_2 = arith.constant 0 : index
    %c0_3 = arith.constant 0 : index
    %c0_4 = arith.constant 0 : index
    %4 = vector.load %arg3[%c0_2, %c0_3, %c0_4] : memref<1x256x1536xbf16, #tpu.memory_space<vmem>>, vector<1x256x1536xbf16>
    %5 = vector.shape_cast %4 : vector<1x256x1536xbf16> to vector<256x1536xbf16>
    %cst = arith.constant dense<0.000000e+00> : vector<16x1536xf32>
    %6 = tpu.matmul %3, %5, %cst {dimension_numbers = #tpu.dot_dimension_numbers<[1], [0], [0], [1], [0, 0, 1, 1], [], []>} : vector<16x256xbf16>, vector<256x1536xbf16>, vector<16x1536xf32> -> vector<16x1536xf32>
    %7 = vector.extract_strided_slice %6 {offsets = [0, 0], sizes = [16, 768], strides = [1, 1]} : vector<16x1536xf32> to vector<16x768xf32>
    %8 = vector.extract_strided_slice %6 {offsets = [0, 768], sizes = [16, 768], strides = [1, 1]} : vector<16x1536xf32> to vector<16x768xf32>
    %9 = arith.negf %7 : vector<16x768xf32>
    %10 = math.exp %9 : vector<16x768xf32>
    %cst_5 = arith.constant 1.000000e+00 : f32
    %11 = vector.broadcast %cst_5 : f32 to vector<16x768xf32>
    %12 = arith.addf %11, %10 : vector<16x768xf32>
    %13 = arith.divf %11, %12 : vector<16x768xf32>
    %14 = arith.mulf %7, %13 : vector<16x768xf32>
    %15 = arith.mulf %14, %8 : vector<16x768xf32>
    %16 = arith.truncf %15 : vector<16x768xf32> to vector<16x768xbf16>
    %c0_6 = arith.constant 0 : index
    %c0_7 = arith.constant 0 : index
    %17 = vector.load %arg6[%c0_6, %c0_7] : memref<16x256xf32, #tpu.memory_space<vmem>>, vector<16x256xf32>
    %c0_8 = arith.constant 0 : index
    %c0_9 = arith.constant 0 : index
    %c0_10 = arith.constant 0 : index
    %18 = vector.load %arg4[%c0_8, %c0_9, %c0_10] : memref<1x768x256xbf16, #tpu.memory_space<vmem>>, vector<1x768x256xbf16>
    %19 = vector.shape_cast %18 : vector<1x768x256xbf16> to vector<768x256xbf16>
    %cst_11 = arith.constant dense<0.000000e+00> : vector<16x256xf32>
    %20 = tpu.matmul %16, %19, %cst_11 {dimension_numbers = #tpu.dot_dimension_numbers<[1], [0], [0], [1], [0, 0, 1, 1], [], []>} : vector<16x768xbf16>, vector<768x256xbf16>, vector<16x256xf32> -> vector<16x256xf32>
    %21 = arith.addf %17, %20 : vector<16x256xf32>
    %c0_12 = arith.constant 0 : index
    %c0_13 = arith.constant 0 : index
    %22 = vector.load %arg6[%c0_12, %c0_13] : memref<16x256xf32, #tpu.memory_space<vmem>>, vector<16x256xf32>
    tpu.vector_store %arg6[%c0_12, %c0_13], %21 {strides = array<i32>} : memref<16x256xf32, #tpu.memory_space<vmem>>, vector<16x256xf32>,
    %c0_i32_14 = arith.constant 0 : i32
    %23 = arith.cmpi eq, %arg1, %c0_i32_14 : i32
    %24 = arith.extui %23 : i1 to i32
    %c0_i32_15 = arith.constant 0 : i32
    %25 = arith.cmpi ne, %24, %c0_i32_15 : i32
    scf.if %25 {
      %c0_16 = arith.constant 0 : index
      %c0_17 = arith.constant 0 : index
      %26 = vector.load %arg6[%c0_16, %c0_17] : memref<16x256xf32, #tpu.memory_space<vmem>>, vector<16x256xf32>
      %c0_18 = arith.constant 0 : index
      %c0_19 = arith.constant 0 : index
      %27 = vector.load %arg5[%c0_18, %c0_19] : memref<16x256xf32, #tpu.memory_space<vmem>>, vector<16x256xf32>
      tpu.vector_store %arg5[%c0_18, %c0_19], %26 {strides = array<i32>} : memref<16x256xf32, #tpu.memory_space<vmem>>, vector<16x256xf32>,
    } else {
    }
    return
  }
  func.func @transform_0(%arg0: i32, %arg1: i32) -> (i32, i32) {
    %c0_i32 = arith.constant 0 : i32
    %c0_i32_0 = arith.constant 0 : i32
    return %arg0, %c0_i32 : i32, i32
  }
  func.func @transform_1(%arg0: i32, %arg1: i32) -> (i32, i32, i32) {
    %c0_i32 = arith.constant 0 : i32
    %c0_i32_0 = arith.constant 0 : i32
    %c0_i32_1 = arith.constant 0 : i32
    return %arg1, %c0_i32, %c0_i32_0 : i32, i32, i32
  }
  func.func @transform_2(%arg0: i32, %arg1: i32) -> (i32, i32, i32) {
    %c0_i32 = arith.constant 0 : i32
    %c0_i32_0 = arith.constant 0 : i32
    %c0_i32_1 = arith.constant 0 : i32
    return %arg1, %c0_i32, %c0_i32_0 : i32, i32, i32
  }
  func.func @transform_3(%arg0: i32, %arg1: i32) -> (i32, i32) {
    %c0_i32 = arith.constant 0 : i32
    %c0_i32_0 = arith.constant 0 : i32
    return %arg0, %c0_i32 : i32, i32
  }
}

</mosaic_0001>

<bundles_post_ra>
// kernel: tpu_custom_call.1
= control target key start
LH: loop header
LB: loop body
LE: loop exit
PB: predicated region body
PF: predicated region fallthrough
CT: control target
= control target key end

     0   :  { %8 = vsyncpa [#allocation4], 0  ;;  %s3305_s0 = inlined_call_operand.hbm [shape: bf16[16,256], index: 0, kind: input, shape index: {}]   ;;  %s3306_s1 = inlined_call_operand.hbm [shape: bf16[1,256,1536], index: 1, kind: input, shape index: {}]   ;;  %s3307_s2 = inlined_call_operand.hbm [shape: bf16[1,768,256], index: 2, kind: input, shape index: {}]   ;;  %s3308_s3 = inlined_call_operand.hbm [shape: f32[16,256], index: 3, kind: output, shape index: {}]  }
   0x1   :  { %9 = vsyncpa [#allocation7], 0 }
   0x2   :  { %10 = vsyncpa [#allocation5], 0  ;;  %s3215_s12 = smov [#allocation6]  }
   0x3   :  { %s28_s13 = sshll.u32 %s3215_s12, 4  ;;  %s29_s13 = int_to_ptr.vmem [resolvable:$true] %s28_s13 }
   0x4   :  { %s3137_s14 = scalar_lea.vmem %s29_s13, 24576  ;;  %p3142_p1 = scmp.lt.s32.totalorder %s29_s13, %s29_s13 }
   0x5   :  { %p3138_p0 = scmp.ne.s32.totalorder %s29_s13, %s3137_s14  ;;  %p3143_p2 = scmp.lt.s32.totalorder %s3137_s14, %s3137_s14 }
   0x7   :  { %p3144_p3 = por %p3143_p2, %p3142_p1 }
   0x9   :  { %p3145_p4 = pnand %p3144_p3, %p3138_p0 }
   0xb   :  { %3148 = shalt.err (!%p3145_p4)
}
   0xc   :  { %s3216_s15 = smov 768   ;;  %s3217_s16 = smov 48  }
   0xd   :  { %34 = dma.hbm_to_vmem [thread:$0]  %s3306_s1, 24576, %s29_s13, [#allocation7], %s3216_s15, %s3216_s15, %s3217_s16  }
   0xe   :  { %s3218_s19 = smov [#allocation3]  }
   0xf   :  { %s16_s20 = sshll.u32 %s3218_s19, 4  ;;  %s17_s20 = int_to_ptr.vmem [resolvable:$true] %s16_s20 }
  0x10   :  { %s3157_s21 = scalar_lea.vmem %s17_s20, 256  ;;  %p3162_p6 = scmp.lt.s32.totalorder %s17_s20, %s17_s20 }
  0x11   :  { %p3158_p5 = scmp.ne.s32.totalorder %s17_s20, %s3157_s21  ;;  %p3163_p7 = scmp.lt.s32.totalorder %s3157_s21, %s3157_s21 }
  0x13   :  { %p3164_p8 = por %p3163_p7, %p3162_p6 }
  0x15   :  { %p3165_p9 = pnand %p3164_p8, %p3158_p5 }
  0x17   :  { %3168 = shalt.err (!%p3165_p9)
}
  0x18   :  { %s3219_s22 = smov 128   ;;  %s3220_s23 = smov 8  }
  0x19   :  { %22 = dma.hbm_to_vmem [thread:$0]  %s3305_s0, 256, %s17_s20, [#allocation4], %s3219_s22, %s3219_s22, %s3220_s23  }
  0x1a   :  { %s3221_s26 = smov [#allocation8]  }
  0x1b   :  { %s40_s27 = sshll.u32 %s3221_s26, 4  ;;  %s41_s27 = int_to_ptr.vmem [resolvable:$true] %s40_s27 }
  0x1c   :  { %s3177_s1 = scalar_lea.vmem %s41_s27, 12288  ;;  %p3182_p11 = scmp.lt.s32.totalorder %s41_s27, %s41_s27 }
  0x1d   :  { %p3178_p10 = scmp.ne.s32.totalorder %s41_s27, %s3177_s1  ;;  %p3183_p12 = scmp.lt.s32.totalorder %s3177_s1, %s3177_s1 }
  0x1f   :  { %p3184_p13 = por %p3183_p12, %p3182_p11 }
  0x21   :  { %p3185_p0 = pnand %p3184_p13, %p3178_p10 }
  0x23   :  { %3188 = shalt.err (!%p3185_p0)
}
  0x24   :  { %46 = dma.hbm_to_vmem [thread:$0]  %s3307_s2, 12288, %s41_s27, [#allocation7], %s3219_s22, %s3219_s22, %s3220_s23  }
  0x25   :  { %3209 = dma.done.wait [#allocation4], 256  }
  0x26   :  { %3210 = vsyncadd [#allocation4], 4294967040 }
  0x27   :  { %3211 = dma.done.wait [#allocation7], 36864  }
  0x28   :  { %3212 = vsyncadd [#allocation7], 4294930432  ;;  %v2646_v0 = vld [vmem:[#allocation6 + $0x2a4] ss:$48 sps:$4 sm:$0xff]   ;;  %v2648_v1 = vld [vmem:[#allocation6 + $0x2ac] ss:$48 sps:$4 sm:$0xff]  }
  0x29   :  { %1228 = vmatprep.subr.bf16.mxu0 %v2646_v0  ;;  %v2650_v2 = vld [vmem:[#allocation6 + $0x2a0] ss:$48 sps:$4 sm:$0xff]   ;;  %v2651_v3 = vld [vmem:[#allocation6 + $0x2a8] ss:$48 sps:$4 sm:$0xff]   ;;  %1271 = vmatprep.subr.bf16.mxu1 %v2648_v1  ;;  %v2652_v4 = vld [vmem:[#allocation6 + $0x244] ss:$48 sps:$4 sm:$0xff]  }
  0x2a   :  { %1229 = vmatpush1.bf16.msra.mxu0 %v2650_v2  ;;  %1272 = vmatpush1.bf16.msra.mxu1 %v2651_v3  ;;  %v2654_v5 = vld [vmem:[#allocation6 + $0x24c] ss:$48 sps:$4 sm:$0xff]   ;;  %v2656_v6 = vld [vmem:[#allocation6 + $0x240] ss:$48 sps:$4 sm:$0xff]   ;;  %v2657_v7 = vld [vmem:[#allocation6 + $0x248] ss:$48 sps:$4 sm:$0xff]  }
  0x2b   :  { %1230 = vmatprep.subr.bf16.mxu0 %v2652_v4  ;;  %1273 = vmatprep.subr.bf16.mxu1 %v2654_v5  ;;  %v2658_v8 = vld [vmem:[#allocation6 + $0x1e4] ss:$48 sps:$4 sm:$0xff]   ;;  %v2660_v9 = vld [vmem:[#allocation6 + $0x1ec] ss:$48 sps:$4 sm:$0xff]   ;;  %v2662_v10 = vld [vmem:[#allocation6 + $0x1e0] ss:$48 sps:$4 sm:$0xff]  }
  0x2c   :  { %v2663_v11 = vld [vmem:[#allocation6 + $0x1e8] ss:$48 sps:$4 sm:$0xff]   ;;  %v2664_v12 = vld [vmem:[#allocation6 + $0x184] ss:$48 sps:$4 sm:$0xff]   ;;  %v2666_v13 = vld [vmem:[#allocation6 + $0x18c] ss:$48 sps:$4 sm:$0xff]  }
  0x2d   :  { %v2668_v14 = vld [vmem:[#allocation6 + $0x180] ss:$48 sps:$4 sm:$0xff]   ;;  %v2669_v15 = vld [vmem:[#allocation6 + $0x188] ss:$48 sps:$4 sm:$0xff]   ;;  %v2670_v16 = vld [vmem:[#allocation6 + $0x124] ss:$48 sps:$4 sm:$0xff]  }
  0x2e   :  { %1231 = vmatpush1.bf16.msra.mxu0 %v2656_v6  ;;  %1274 = vmatpush1.bf16.msra.mxu1 %v2657_v7  ;;  %v2672_v17 = vld [vmem:[#allocation6 + $0x12c] ss:$48 sps:$4 sm:$0xff]   ;;  %v2674_v18 = vld [vmem:[#allocation6 + $0x120] ss:$48 sps:$4 sm:$0xff]   ;;  %v2675_v19 = vld [vmem:[#allocation6 + $0x128] ss:$48 sps:$4 sm:$0xff]  }
  0x2f   :  { %1232 = vmatprep.subr.bf16.mxu0 %v2658_v8  ;;  %1275 = vmatprep.subr.bf16.mxu1 %v2660_v9  ;;  %v2676_v20 = vld [vmem:[#allocation6 + $0xc4] ss:$48 sps:$4 sm:$0xff]   ;;  %v2678_v21 = vld [vmem:[#allocation6 + $0xcc] ss:$48 sps:$4 sm:$0xff]   ;;  %v2680_v22 = vld [vmem:[#allocation6 + $0xc0] ss:$48 sps:$4 sm:$0xff]  }
  0x30   :  { %v2681_v23 = vld [vmem:[#allocation6 + $0xc8] ss:$48 sps:$4 sm:$0xff]   ;;  %v2682_v24 = vld [vmem:[#allocation6 + $0x64] ss:$48 sps:$4 sm:$0xff]   ;;  %v2684_v25 = vld [vmem:[#allocation6 + $0x6c] ss:$48 sps:$4 sm:$0xff]  }
  0x31   :  { %v2686_v26 = vld [vmem:[#allocation6 + $0x60] ss:$48 sps:$4 sm:$0xff]   ;;  %v2687_v27 = vld [vmem:[#allocation6 + $0x68] ss:$48 sps:$4 sm:$0xff]   ;;  %v2688_v28 = vld [vmem:[#allocation6 + $0x4] ss:$48 sps:$4 sm:$0xff]  }
  0x32   :  { %1233 = vmatpush1.bf16.msra.mxu0 %v2662_v10  ;;  %1276 = vmatpush1.bf16.msra.mxu1 %v2663_v11  ;;  %v2690_v29 = vld [vmem:[#allocation6 + $0xc] ss:$48 sps:$4 sm:$0xff]   ;;  %v2692_v30 = vld [vmem:[#allocation6] ss:$48 sps:$4 sm:$0xff]   ;;  %v2693_v31 = vld [vmem:[#allocation6 + $0x8] ss:$48 sps:$4 sm:$0xff]  }
  0x33   :  { %1234 = vmatprep.subr.bf16.mxu0 %v2664_v12  ;;  %1277 = vmatprep.subr.bf16.mxu1 %v2666_v13  ;;  %v2694_v32 = vld [vmem:[#allocation6 + $0x5a4] ss:$48 sps:$4 sm:$0xff]   ;;  %v2696_v33 = vld [vmem:[#allocation6 + $0x5ac] ss:$48 sps:$4 sm:$0xff]   ;;  %v2698_v34 = vld [vmem:[#allocation6 + $0x5a0] ss:$48 sps:$4 sm:$0xff]  }
  0x34   :  { %v2699_v35 = vld [vmem:[#allocation6 + $0x5a8] ss:$48 sps:$4 sm:$0xff]   ;;  %v2700_v36 = vld [vmem:[#allocation6 + $0x544] ss:$48 sps:$4 sm:$0xff]   ;;  %v2702_v37 = vld [vmem:[#allocation6 + $0x54c] ss:$48 sps:$4 sm:$0xff]  }
  0x35   :  { %v2704_v38 = vld [vmem:[#allocation6 + $0x540] ss:$48 sps:$4 sm:$0xff]   ;;  %v2705_v39 = vld [vmem:[#allocation6 + $0x548] ss:$48 sps:$4 sm:$0xff]   ;;  %v2706_v40 = vld [vmem:[#allocation6 + $0x4e4] ss:$48 sps:$4 sm:$0xff]  }
  0x36   :  { %1235 = vmatpush1.bf16.msra.mxu0 %v2668_v14  ;;  %1278 = vmatpush1.bf16.msra.mxu1 %v2669_v15  ;;  %v2708_v41 = vld [vmem:[#allocation6 + $0x4ec] ss:$48 sps:$4 sm:$0xff]   ;;  %v2710_v42 = vld [vmem:[#allocation6 + $0x4e0] ss:$48 sps:$4 sm:$0xff]   ;;  %v2711_v43 = vld [vmem:[#allocation6 + $0x4e8] ss:$48 sps:$4 sm:$0xff]  }
  0x37   :  { %1236 = vmatprep.subr.bf16.mxu0 %v2670_v16  ;;  %1279 = vmatprep.subr.bf16.mxu1 %v2672_v17  ;;  %v2712_v44 = vld [vmem:[#allocation6 + $0x484] ss:$48 sps:$4 sm:$0xff]   ;;  %v2714_v45 = vld [vmem:[#allocation6 + $0x48c] ss:$48 sps:$4 sm:$0xff]   ;;  %v2716_v46 = vld [vmem:[#allocation6 + $0x480] ss:$48 sps:$4 sm:$0xff]  }
  0x38   :  { %v2717_v47 = vld [vmem:[#allocation6 + $0x488] ss:$48 sps:$4 sm:$0xff]   ;;  %v3254_v48 = vld [vmem:[#allocation3 + $0x4] ss:$8 sps:$4 sm:$0xff]   ;;  %v2722_v51 = vld [vmem:[#allocation6 + $0x420] ss:$48 sps:$4 sm:$0xff]  }
  0x39   :  { %v2718_v49 = vld [vmem:[#allocation6 + $0x424] ss:$48 sps:$4 sm:$0xff]   ;;  %v2720_v50 = vld [vmem:[#allocation6 + $0x42c] ss:$48 sps:$4 sm:$0xff]   ;;  %1260 = vmatprep.mubr.bf16.mxu0 %v3254_v48  ;;  %1303 = vmatprep.mubr.bf16.mxu1 %v3254_v48  ;;  %v2723_v52 = vld [vmem:[#allocation6 + $0x428] ss:$48 sps:$4 sm:$0xff]  }
  0x3a   :  { %1237 = vmatpush1.bf16.msra.mxu0 %v2674_v18  ;;  %1280 = vmatpush1.bf16.msra.mxu1 %v2675_v19  ;;  %v2724_v53 = vld [vmem:[#allocation6 + $0x3c4] ss:$48 sps:$4 sm:$0xff]   ;;  %v2726_v54 = vld [vmem:[#allocation6 + $0x3cc] ss:$48 sps:$4 sm:$0xff]   ;;  %v2728_v55 = vld [vmem:[#allocation6 + $0x3c0] ss:$48 sps:$4 sm:$0xff]  }
  0x3b   :  { %1238 = vmatprep.subr.bf16.mxu0 %v2676_v20  ;;  %1281 = vmatprep.subr.bf16.mxu1 %v2678_v21  ;;  %v2729_v56 = vld [vmem:[#allocation6 + $0x3c8] ss:$48 sps:$4 sm:$0xff]   ;;  %v2730_v57 = vld [vmem:[#allocation6 + $0x364] ss:$48 sps:$4 sm:$0xff]   ;;  %v2732_v58 = vld [vmem:[#allocation6 + $0x36c] ss:$48 sps:$4 sm:$0xff]  }
  0x3c   :  { %v2734_v59 = vld [vmem:[#allocation6 + $0x360] ss:$48 sps:$4 sm:$0xff]   ;;  %v2735_v60 = vld [vmem:[#allocation6 + $0x368] ss:$48 sps:$4 sm:$0xff]   ;;  %v2736_v61 = vld [vmem:[#allocation6 + $0x304] ss:$48 sps:$4 sm:$0xff]  }
  0x3d   :  { %v2738_v62 = vld [vmem:[#allocation6 + $0x30c] ss:$48 sps:$4 sm:$0xff]   ;;  %v2740_v63 = vld [vmem:[#allocation6 + $0x300] ss:$48 sps:$4 sm:$0xff]   ;;  %v2741_v0 = vld [vmem:[#allocation6 + $0x308] ss:$48 sps:$4 sm:$0xff]  }
  0x3e   :  { %1239 = vmatpush1.bf16.msra.mxu0 %v2680_v22  ;;  %1282 = vmatpush1.bf16.msra.mxu1 %v2681_v23  ;;  %v2747_v1 = vld [vmem:[#allocation6 + $0x2b4] ss:$48 sps:$4 sm:$0xff]   ;;  %v2750_v2 = vld [vmem:[#allocation6 + $0x2bc] ss:$48 sps:$4 sm:$0xff]   ;;  %v3258_v3 = vld [vmem:[#allocation3] ss:$8 sps:$4 sm:$0xff]  }
  0x3f   :  { %1240 = vmatprep.subr.bf16.mxu0 %v2682_v24  ;;  %1283 = vmatprep.subr.bf16.mxu1 %v2684_v25  ;;  %v2745_v4 = vld [vmem:[#allocation6 + $0x2b0] ss:$48 sps:$4 sm:$0xff]   ;;  %v2748_v5 = vld [vmem:[#allocation6 + $0x2b8] ss:$48 sps:$4 sm:$0xff]   ;;  %v2753_v6 = vld [vmem:[#allocation6 + $0x254] ss:$48 sps:$4 sm:$0xff]  }
  0x40   :  { %v2756_v7 = vld [vmem:[#allocation6 + $0x25c] ss:$48 sps:$4 sm:$0xff]   ;;  %v2751_v8 = vld [vmem:[#allocation6 + $0x250] ss:$48 sps:$4 sm:$0xff]   ;;  %v2754_v9 = vld [vmem:[#allocation6 + $0x258] ss:$48 sps:$4 sm:$0xff]  }
  0x41   :  { %v2759_v10 = vld [vmem:[#allocation6 + $0x1f4] ss:$48 sps:$4 sm:$0xff]   ;;  %v2762_v11 = vld [vmem:[#allocation6 + $0x1fc] ss:$48 sps:$4 sm:$0xff]   ;;  %v2757_v12 = vld [vmem:[#allocation6 + $0x1f0] ss:$48 sps:$4 sm:$0xff]  }
  0x42   :  { %1241 = vmatpush1.bf16.msra.mxu0 %v2686_v26  ;;  %1284 = vmatpush1.bf16.msra.mxu1 %v2687_v27  ;;  %v2760_v13 = vld [vmem:[#allocation6 + $0x1f8] ss:$48 sps:$4 sm:$0xff]   ;;  %v2765_v14 = vld [vmem:[#allocation6 + $0x194] ss:$48 sps:$4 sm:$0xff]   ;;  %v2768_v15 = vld [vmem:[#allocation6 + $0x19c] ss:$48 sps:$4 sm:$0xff]  }
  0x43   :  { %1242 = vmatprep.subr.bf16.mxu0 %v2688_v28  ;;  %1285 = vmatprep.subr.bf16.mxu1 %v2690_v29  ;;  %v2763_v16 = vld [vmem:[#allocation6 + $0x190] ss:$48 sps:$4 sm:$0xff]   ;;  %v2766_v17 = vld [vmem:[#allocation6 + $0x198] ss:$48 sps:$4 sm:$0xff]   ;;  %v2771_v18 = vld [vmem:[#allocation6 + $0x134] ss:$48 sps:$4 sm:$0xff]  }
  0x44   :  { %v2774_v19 = vld [vmem:[#allocation6 + $0x13c] ss:$48 sps:$4 sm:$0xff]   ;;  %v2769_v20 = vld [vmem:[#allocation6 + $0x130] ss:$48 sps:$4 sm:$0xff]   ;;  %v2772_v21 = vld [vmem:[#allocation6 + $0x138] ss:$48 sps:$4 sm:$0xff]  }
  0x45   :  { %v2777_v22 = vld [vmem:[#allocation6 + $0xd4] ss:$48 sps:$4 sm:$0xff]   ;;  %v2780_v23 = vld [vmem:[#allocation6 + $0xdc] ss:$48 sps:$4 sm:$0xff]   ;;  %v2775_v24 = vld [vmem:[#allocation6 + $0xd0] ss:$48 sps:$4 sm:$0xff]  }
  0x46   :  { %1243 = vmatpush1.bf16.msra.mxu0 %v2692_v30  ;;  %1286 = vmatpush1.bf16.msra.mxu1 %v2693_v31  ;;  %v2778_v25 = vld [vmem:[#allocation6 + $0xd8] ss:$48 sps:$4 sm:$0xff]   ;;  %v2783_v26 = vld [vmem:[#allocation6 + $0x74] ss:$48 sps:$4 sm:$0xff]   ;;  %v2786_v27 = vld [vmem:[#allocation6 + $0x7c] ss:$48 sps:$4 sm:$0xff]  }
  0x47   :  { %1244 = vmatprep.subr.bf16.mxu0 %v2694_v32  ;;  %1287 = vmatprep.subr.bf16.mxu1 %v2696_v33  ;;  %v2781_v28 = vld [vmem:[#allocation6 + $0x70] ss:$48 sps:$4 sm:$0xff]   ;;  %v2784_v29 = vld [vmem:[#allocation6 + $0x78] ss:$48 sps:$4 sm:$0xff]   ;;  %v2789_v30 = vld [vmem:[#allocation6 + $0x14] ss:$48 sps:$4 sm:$0xff]  }
  0x48   :  { %v2792_v31 = vld [vmem:[#allocation6 + $0x1c] ss:$48 sps:$4 sm:$0xff]   ;;  %v2787_v32 = vld [vmem:[#allocation6 + $0x10] ss:$48 sps:$4 sm:$0xff]   ;;  %v2790_v33 = vld [vmem:[#allocation6 + $0x18] ss:$48 sps:$4 sm:$0xff]  }
  0x49   :  { %s3222_s0 = smov [#allocation9]  }
  0x4a   :  { %1245 = vmatpush2.bf16.msra.mxu0 %v2698_v34  ;;  %1288 = vmatpush2.bf16.msra.mxu1 %v2699_v35  ;;  %v2795_v34 = vld [vmem:[#allocation6 + $0x5b4] ss:$48 sps:$4 sm:$0xff]   ;;  %v2798_v35 = vld [vmem:[#allocation6 + $0x5bc] ss:$48 sps:$4 sm:$0xff]   ;;  %s2321_s2 = sshll.u32 %s3222_s0, 4  ;;  %s2322_s2 = int_to_ptr.vmem [resolvable:$true] %s2321_s2 }
  0x4b   :  { %1246 = vmatprep.subr.bf16.mxu0 %v2700_v36  ;;  %1289 = vmatprep.subr.bf16.mxu1 %v2702_v37  ;;  %v2793_v36 = vld [vmem:[#allocation6 + $0x5b0] ss:$48 sps:$4 sm:$0xff]   ;;  %v2796_v37 = vld [vmem:[#allocation6 + $0x5b8] ss:$48 sps:$4 sm:$0xff]   ;;  %s3189_s30 = scalar_lea.vmem %s2322_s2, 512  ;;  %p3194_p2 = scmp.lt.s32.totalorder %s2322_s2, %s2322_s2 }
  0x4c   :  { %p3190_p1 = scmp.ne.s32.totalorder %s2322_s2, %s3189_s30  ;;  %p3195_p3 = scmp.lt.s32.totalorder %s3189_s30, %s3189_s30 }
  0x4e   :  { %1247 = vmatpush2.bf16.msra.mxu0 %v2704_v38  ;;  %1290 = vmatpush2.bf16.msra.mxu1 %v2705_v39  ;;  %v2801_v38 = vld [vmem:[#allocation6 + $0x554] ss:$48 sps:$4 sm:$0xff]   ;;  %v2804_v39 = vld [vmem:[#allocation6 + $0x55c] ss:$48 sps:$4 sm:$0xff]   ;;  %p3196_p4 = por %p3195_p3, %p3194_p2 }
  0x4f   :  { %1248 = vmatprep.subr.bf16.mxu0 %v2706_v40  ;;  %1291 = vmatprep.subr.bf16.mxu1 %v2708_v41  ;;  %v2799_v40 = vld [vmem:[#allocation6 + $0x550] ss:$48 sps:$4 sm:$0xff]   ;;  %v2802_v41 = vld [vmem:[#allocation6 + $0x558] ss:$48 sps:$4 sm:$0xff]  }
  0x50   :  { %p3197_p5 = pnand %p3196_p4, %p3190_p1 }
  0x52   :  { %1249 = vmatpush2.bf16.msra.mxu0 %v2710_v42  ;;  %1292 = vmatpush2.bf16.msra.mxu1 %v2711_v43  ;;  %v2807_v42 = vld [vmem:[#allocation6 + $0x4f4] ss:$48 sps:$4 sm:$0xff]   ;;  %v2810_v43 = vld [vmem:[#allocation6 + $0x4fc] ss:$48 sps:$4 sm:$0xff]  }
  0x53   :  { %1250 = vmatprep.subr.bf16.mxu0 %v2712_v44  ;;  %1293 = vmatprep.subr.bf16.mxu1 %v2714_v45  ;;  %v2805_v44 = vld [vmem:[#allocation6 + $0x4f0] ss:$48 sps:$4 sm:$0xff]   ;;  %v2808_v45 = vld [vmem:[#allocation6 + $0x4f8] ss:$48 sps:$4 sm:$0xff]  }
  0x56   :  { %1251 = vmatpush2.bf16.msra.mxu0 %v2716_v46  ;;  %1294 = vmatpush2.bf16.msra.mxu1 %v2717_v47  ;;  %v2813_v46 = vld [vmem:[#allocation6 + $0x494] ss:$48 sps:$4 sm:$0xff]   ;;  %v2816_v47 = vld [vmem:[#allocation6 + $0x49c] ss:$48 sps:$4 sm:$0xff]  }
  0x57   :  { %1252 = vmatprep.subr.bf16.mxu0 %v2718_v49  ;;  %1295 = vmatprep.subr.bf16.mxu1 %v2720_v50  ;;  %v2811_v49 = vld [vmem:[#allocation6 + $0x490] ss:$48 sps:$4 sm:$0xff]   ;;  %v2814_v50 = vld [vmem:[#allocation6 + $0x498] ss:$48 sps:$4 sm:$0xff]  }
  0x5a   :  { %1253 = vmatpush2.bf16.msra.mxu0 %v2722_v51  ;;  %1296 = vmatpush2.bf16.msra.mxu1 %v2723_v52  ;;  %v2819_v51 = vld [vmem:[#allocation6 + $0x434] ss:$48 sps:$4 sm:$0xff]   ;;  %v2822_v52 = vld [vmem:[#allocation6 + $0x43c] ss:$48 sps:$4 sm:$0xff]  }
  0x5b   :  { %1254 = vmatprep.subr.bf16.mxu0 %v2724_v53  ;;  %1297 = vmatprep.subr.bf16.mxu1 %v2726_v54  ;;  %v2817_v53 = vld [vmem:[#allocation6 + $0x430] ss:$48 sps:$4 sm:$0xff]   ;;  %v2820_v54 = vld [vmem:[#allocation6 + $0x438] ss:$48 sps:$4 sm:$0xff]  }
  0x5e   :  { %1255 = vmatpush2.bf16.msra.mxu0 %v2728_v55  ;;  %1298 = vmatpush2.bf16.msra.mxu1 %v2729_v56  ;;  %v2825_v55 = vld [vmem:[#allocation6 + $0x3d4] ss:$48 sps:$4 sm:$0xff]   ;;  %v2828_v56 = vld [vmem:[#allocation6 + $0x3dc] ss:$48 sps:$4 sm:$0xff]  }
  0x5f   :  { %1256 = vmatprep.subr.bf16.mxu0 %v2730_v57  ;;  %1299 = vmatprep.subr.bf16.mxu1 %v2732_v58  ;;  %v2823_v57 = vld [vmem:[#allocation6 + $0x3d0] ss:$48 sps:$4 sm:$0xff]   ;;  %v2826_v58 = vld [vmem:[#allocation6 + $0x3d8] ss:$48 sps:$4 sm:$0xff]  }
  0x62   :  { %1257 = vmatpush2.bf16.msra.mxu0 %v2734_v59  ;;  %1300 = vmatpush2.bf16.msra.mxu1 %v2735_v60  ;;  %v2831_v59 = vld [vmem:[#allocation6 + $0x374] ss:$48 sps:$4 sm:$0xff]   ;;  %v2834_v60 = vld [vmem:[#allocation6 + $0x37c] ss:$48 sps:$4 sm:$0xff]  }
  0x63   :  { %1258 = vmatprep.subr.bf16.mxu0 %v2736_v61  ;;  %1301 = vmatprep.subr.bf16.mxu1 %v2738_v62  ;;  %v2829_v61 = vld [vmem:[#allocation6 + $0x370] ss:$48 sps:$4 sm:$0xff]   ;;  %v2832_v62 = vld [vmem:[#allocation6 + $0x378] ss:$48 sps:$4 sm:$0xff]  }
  0x66   :  { %1259 = vmatpush2.bf16.msra.mxu0 %v2740_v63  ;;  %1302 = vmatpush2.bf16.msra.mxu1 %v2741_v0  ;;  %v2837_v63 = vld [vmem:[#allocation6 + $0x314] ss:$48 sps:$4 sm:$0xff]   ;;  %v2840_v0 = vld [vmem:[#allocation6 + $0x31c] ss:$48 sps:$4 sm:$0xff]  }
  0x67   :  { %1314 = vmatprep.subr.bf16.mxu0 %v2747_v1  ;;  %1357 = vmatprep.subr.bf16.mxu1 %v2750_v2  ;;  %v2835_v1 = vld [vmem:[#allocation6 + $0x310] ss:$48 sps:$4 sm:$0xff]   ;;  %v2838_v2 = vld [vmem:[#allocation6 + $0x318] ss:$48 sps:$4 sm:$0xff]  }
  0x69   :  { %1261 = vmatmul.mubr.bf16.vlgmr.msra.gmra.mxu0 %v3258_v3  ;;  %1304 = vmatmul.mubr.bf16.vlgmr.msra.gmra.mxu1 %v3258_v3 }
  0x6a   :  { %1315 = vmatpush1.bf16.msra.mxu0 %v2745_v4  ;;  %1358 = vmatpush1.bf16.msra.mxu1 %v2748_v5  ;;  %v2843_v4 = vld [vmem:[#allocation6 + $0x2c4] ss:$48 sps:$4 sm:$0xff]   ;;  %v2846_v5 = vld [vmem:[#allocation6 + $0x2cc] ss:$48 sps:$4 sm:$0xff]  }
  0x6b   :  { %1316 = vmatprep.subr.bf16.mxu0 %v2753_v6  ;;  %1359 = vmatprep.subr.bf16.mxu1 %v2756_v7  ;;  %v2841_v6 = vld [vmem:[#allocation6 + $0x2c0] ss:$48 sps:$4 sm:$0xff]   ;;  %v2844_v7 = vld [vmem:[#allocation6 + $0x2c8] ss:$48 sps:$4 sm:$0xff]  }
  0x6c   :  { %1346 = vmatprep.mubr.bf16.mxu0 %v3254_v48  ;;  %1389 = vmatprep.mubr.bf16.mxu1 %v3254_v48 }
  0x6e   :  { %1317 = vmatpush1.bf16.msra.mxu0 %v2751_v8  ;;  %1360 = vmatpush1.bf16.msra.mxu1 %v2754_v9  ;;  %v2849_v8 = vld [vmem:[#allocation6 + $0x264] ss:$48 sps:$4 sm:$0xff]   ;;  %v2852_v9 = vld [vmem:[#allocation6 + $0x26c] ss:$48 sps:$4 sm:$0xff]  }
  0x6f   :  { %1318 = vmatprep.subr.bf16.mxu0 %v2759_v10  ;;  %1361 = vmatprep.subr.bf16.mxu1 %v2762_v11  ;;  %v2847_v10 = vld [vmem:[#allocation6 + $0x260] ss:$48 sps:$4 sm:$0xff]   ;;  %v2850_v11 = vld [vmem:[#allocation6 + $0x268] ss:$48 sps:$4 sm:$0xff]  }
  0x72   :  { %1319 = vmatpush1.bf16.msra.mxu0 %v2757_v12  ;;  %1362 = vmatpush1.bf16.msra.mxu1 %v2760_v13  ;;  %v2855_v12 = vld [vmem:[#allocation6 + $0x204] ss:$48 sps:$4 sm:$0xff]   ;;  %v2858_v13 = vld [vmem:[#allocation6 + $0x20c] ss:$48 sps:$4 sm:$0xff]  }
  0x73   :  { %1320 = vmatprep.subr.bf16.mxu0 %v2765_v14  ;;  %1363 = vmatprep.subr.bf16.mxu1 %v2768_v15  ;;  %v2853_v14 = vld [vmem:[#allocation6 + $0x200] ss:$48 sps:$4 sm:$0xff]   ;;  %v2856_v15 = vld [vmem:[#allocation6 + $0x208] ss:$48 sps:$4 sm:$0xff]  }
  0x76   :  { %1321 = vmatpush1.bf16.msra.mxu0 %v2763_v16  ;;  %1364 = vmatpush1.bf16.msra.mxu1 %v2766_v17  ;;  %v2861_v16 = vld [vmem:[#allocation6 + $0x1a4] ss:$48 sps:$4 sm:$0xff]   ;;  %v2864_v17 = vld [vmem:[#allocation6 + $0x1ac] ss:$48 sps:$4 sm:$0xff]  }
  0x77   :  { %1322 = vmatprep.subr.bf16.mxu0 %v2771_v18  ;;  %1365 = vmatprep.subr.bf16.mxu1 %v2774_v19  ;;  %v2859_v18 = vld [vmem:[#allocation6 + $0x1a0] ss:$48 sps:$4 sm:$0xff]   ;;  %v2862_v19 = vld [vmem:[#allocation6 + $0x1a8] ss:$48 sps:$4 sm:$0xff]  }
  0x7a   :  { %1323 = vmatpush1.bf16.msra.mxu0 %v2769_v20  ;;  %1366 = vmatpush1.bf16.msra.mxu1 %v2772_v21  ;;  %v2867_v20 = vld [vmem:[#allocation6 + $0x144] ss:$48 sps:$4 sm:$0xff]   ;;  %v2870_v21 = vld [vmem:[#allocation6 + $0x14c] ss:$48 sps:$4 sm:$0xff]  }
  0x7b   :  { %1324 = vmatprep.subr.bf16.mxu0 %v2777_v22  ;;  %1367 = vmatprep.subr.bf16.mxu1 %v2780_v23  ;;  %v2865_v22 = vld [vmem:[#allocation6 + $0x140] ss:$48 sps:$4 sm:$0xff]   ;;  %v2868_v23 = vld [vmem:[#allocation6 + $0x148] ss:$48 sps:$4 sm:$0xff]  }
  0x7e   :  { %1325 = vmatpush1.bf16.msra.mxu0 %v2775_v24  ;;  %1368 = vmatpush1.bf16.msra.mxu1 %v2778_v25  ;;  %v2873_v24 = vld [vmem:[#allocation6 + $0xe4] ss:$48 sps:$4 sm:$0xff]   ;;  %v2876_v25 = vld [vmem:[#allocation6 + $0xec] ss:$48 sps:$4 sm:$0xff]  }
  0x7f   :  { %1326 = vmatprep.subr.bf16.mxu0 %v2783_v26  ;;  %1369 = vmatprep.subr.bf16.mxu1 %v2786_v27  ;;  %v2874_v26 = vld [vmem:[#allocation6 + $0xe8] ss:$48 sps:$4 sm:$0xff]   ;;  %v2879_v27 = vld [vmem:[#allocation6 + $0x84] ss:$48 sps:$4 sm:$0xff]  }
  0x82   :  { %1327 = vmatpush1.bf16.msra.mxu0 %v2781_v28  ;;  %1370 = vmatpush1.bf16.msra.mxu1 %v2784_v29  ;;  %v2882_v28 = vld [vmem:[#allocation6 + $0x8c] ss:$48 sps:$4 sm:$0xff]   ;;  %v2877_v29 = vld [vmem:[#allocation6 + $0x80] ss:$48 sps:$4 sm:$0xff]  }
  0x83   :  { %1328 = vmatprep.subr.bf16.mxu0 %v2789_v30  ;;  %1371 = vmatprep.subr.bf16.mxu1 %v2792_v31  ;;  %v2880_v30 = vld [vmem:[#allocation6 + $0x88] ss:$48 sps:$4 sm:$0xff]   ;;  %v2885_v31 = vld [vmem:[#allocation6 + $0x24] ss:$48 sps:$4 sm:$0xff]  }
  0x86   :  { %1329 = vmatpush1.bf16.msra.mxu0 %v2787_v32  ;;  %1372 = vmatpush1.bf16.msra.mxu1 %v2790_v33  ;;  %v2888_v32 = vld [vmem:[#allocation6 + $0x2c] ss:$48 sps:$4 sm:$0xff]   ;;  %v2883_v33 = vld [vmem:[#allocation6 + $0x20] ss:$48 sps:$4 sm:$0xff]  }
  0x87   :  { %1330 = vmatprep.subr.bf16.mxu0 %v2795_v34  ;;  %1373 = vmatprep.subr.bf16.mxu1 %v2798_v35  ;;  %v2886_v34 = vld [vmem:[#allocation6 + $0x28] ss:$48 sps:$4 sm:$0xff]   ;;  %v2891_v35 = vld [vmem:[#allocation6 + $0x5c4] ss:$48 sps:$4 sm:$0xff]  }
  0x8a   :  { %1331 = vmatpush2.bf16.msra.mxu0 %v2793_v36  ;;  %1374 = vmatpush2.bf16.msra.mxu1 %v2796_v37  ;;  %v2894_v36 = vld [vmem:[#allocation6 + $0x5cc] ss:$48 sps:$4 sm:$0xff]   ;;  %v2889_v37 = vld [vmem:[#allocation6 + $0x5c0] ss:$48 sps:$4 sm:$0xff]  }
  0x8b   :  { %1332 = vmatprep.subr.bf16.mxu0 %v2801_v38  ;;  %1375 = vmatprep.subr.bf16.mxu1 %v2804_v39  ;;  %v2892_v38 = vld [vmem:[#allocation6 + $0x5c8] ss:$48 sps:$4 sm:$0xff]   ;;  %v2897_v39 = vld [vmem:[#allocation6 + $0x564] ss:$48 sps:$4 sm:$0xff]  }
  0x8e   :  { %1333 = vmatpush2.bf16.msra.mxu0 %v2799_v40  ;;  %1376 = vmatpush2.bf16.msra.mxu1 %v2802_v41  ;;  %v2900_v40 = vld [vmem:[#allocation6 + $0x56c] ss:$48 sps:$4 sm:$0xff]   ;;  %v2895_v41 = vld [vmem:[#allocation6 + $0x560] ss:$48 sps:$4 sm:$0xff]  }
  0x8f   :  { %1334 = vmatprep.subr.bf16.mxu0 %v2807_v42  ;;  %1377 = vmatprep.subr.bf16.mxu1 %v2810_v43  ;;  %v2898_v42 = vld [vmem:[#allocation6 + $0x568] ss:$48 sps:$4 sm:$0xff]   ;;  %v2903_v43 = vld [vmem:[#allocation6 + $0x504] ss:$48 sps:$4 sm:$0xff]  }
  0x92   :  { %1335 = vmatpush2.bf16.msra.mxu0 %v2805_v44  ;;  %1378 = vmatpush2.bf16.msra.mxu1 %v2808_v45  ;;  %v2906_v44 = vld [vmem:[#allocation6 + $0x50c] ss:$48 sps:$4 sm:$0xff]   ;;  %v2901_v45 = vld [vmem:[#allocation6 + $0x500] ss:$48 sps:$4 sm:$0xff]  }
  0x93   :  { %1336 = vmatprep.subr.bf16.mxu0 %v2813_v46  ;;  %1379 = vmatprep.subr.bf16.mxu1 %v2816_v47  ;;  %v2904_v46 = vld [vmem:[#allocation6 + $0x508] ss:$48 sps:$4 sm:$0xff]   ;;  %v2909_v47 = vld [vmem:[#allocation6 + $0x4a4] ss:$48 sps:$4 sm:$0xff]  }
  0x96   :  { %1337 = vmatpush2.bf16.msra.mxu0 %v2811_v49  ;;  %1380 = vmatpush2.bf16.msra.mxu1 %v2814_v50  ;;  %v2912_v49 = vld [vmem:[#allocation6 + $0x4ac] ss:$48 sps:$4 sm:$0xff]   ;;  %v2907_v50 = vld [vmem:[#allocation6 + $0x4a0] ss:$48 sps:$4 sm:$0xff]  }
  0x97   :  { %1338 = vmatprep.subr.bf16.mxu0 %v2819_v51  ;;  %1381 = vmatprep.subr.bf16.mxu1 %v2822_v52  ;;  %v2910_v51 = vld [vmem:[#allocation6 + $0x4a8] ss:$48 sps:$4 sm:$0xff]   ;;  %v2915_v52 = vld [vmem:[#allocation6 + $0x444] ss:$48 sps:$4 sm:$0xff]  }
  0x9a   :  { %1339 = vmatpush2.bf16.msra.mxu0 %v2817_v53  ;;  %1382 = vmatpush2.bf16.msra.mxu1 %v2820_v54  ;;  %v2918_v53 = vld [vmem:[#allocation6 + $0x44c] ss:$48 sps:$4 sm:$0xff]   ;;  %v2913_v54 = vld [vmem:[#allocation6 + $0x440] ss:$48 sps:$4 sm:$0xff]  }
  0x9b   :  { %1340 = vmatprep.subr.bf16.mxu0 %v2825_v55  ;;  %1383 = vmatprep.subr.bf16.mxu1 %v2828_v56  ;;  %v2916_v55 = vld [vmem:[#allocation6 + $0x448] ss:$48 sps:$4 sm:$0xff]   ;;  %v2921_v56 = vld [vmem:[#allocation6 + $0x3e4] ss:$48 sps:$4 sm:$0xff]  }
  0x9e   :  { %1341 = vmatpush2.bf16.msra.mxu0 %v2823_v57  ;;  %1384 = vmatpush2.bf16.msra.mxu1 %v2826_v58  ;;  %v2924_v57 = vld [vmem:[#allocation6 + $0x3ec] ss:$48 sps:$4 sm:$0xff]   ;;  %v2919_v58 = vld [vmem:[#allocation6 + $0x3e0] ss:$48 sps:$4 sm:$0xff]  }
  0x9f   :  { %1342 = vmatprep.subr.bf16.mxu0 %v2831_v59  ;;  %1385 = vmatprep.subr.bf16.mxu1 %v2834_v60  ;;  %v2922_v59 = vld [vmem:[#allocation6 + $0x3e8] ss:$48 sps:$4 sm:$0xff]   ;;  %v2927_v60 = vld [vmem:[#allocation6 + $0x384] ss:$48 sps:$4 sm:$0xff]  }
  0xa2   :  { %1343 = vmatpush2.bf16.msra.mxu0 %v2829_v61  ;;  %1386 = vmatpush2.bf16.msra.mxu1 %v2832_v62  ;;  %v2930_v61 = vld [vmem:[#allocation6 + $0x38c] ss:$48 sps:$4 sm:$0xff]   ;;  %v2925_v62 = vld [vmem:[#allocation6 + $0x380] ss:$48 sps:$4 sm:$0xff]  }
  0xa3   :  { %1344 = vmatprep.subr.bf16.mxu0 %v2837_v63  ;;  %1387 = vmatprep.subr.bf16.mxu1 %v2840_v0  ;;  %v2928_v63 = vld [vmem:[#allocation6 + $0x388] ss:$48 sps:$4 sm:$0xff]   ;;  %v2933_v0 = vld [vmem:[#allocation6 + $0x324] ss:$48 sps:$4 sm:$0xff]  }
  0xa6   :  { %1345 = vmatpush2.bf16.msra.mxu0 %v2835_v1  ;;  %1388 = vmatpush2.bf16.msra.mxu1 %v2838_v2  ;;  %v2936_v1 = vld [vmem:[#allocation6 + $0x32c] ss:$48 sps:$4 sm:$0xff]   ;;  %v2931_v2 = vld [vmem:[#allocation6 + $0x320] ss:$48 sps:$4 sm:$0xff]  }
  0xa7   :  { %1400 = vmatprep.subr.bf16.mxu0 %v2843_v4  ;;  %1443 = vmatprep.subr.bf16.mxu1 %v2846_v5  ;;  %v2934_v4 = vld [vmem:[#allocation6 + $0x328] ss:$48 sps:$4 sm:$0xff]   ;;  %v2939_v5 = vld [vmem:[#allocation8 + $0x74] ss:$8 sps:$4 sm:$0xff]  }
  0xa9   :  { %1347 = vmatmul.mubr.bf16.vlgmr.msra.gmra.mxu0 %v3258_v3  ;;  %1390 = vmatmul.mubr.bf16.vlgmr.msra.gmra.mxu1 %v3258_v3 }
  0xaa   :  { %1401 = vmatpush1.bf16.msra.mxu0 %v2841_v6  ;;  %1444 = vmatpush1.bf16.msra.mxu1 %v2844_v7  ;;  %v2937_v6 = vld [vmem:[#allocation8 + $0x70] ss:$8 sps:$4 sm:$0xff]   ;;  %v2942_v7 = vld [vmem:[#allocation8 + $0x64] ss:$8 sps:$4 sm:$0xff]  }
  0xab   :  { %1402 = vmatprep.subr.bf16.mxu0 %v2849_v8  ;;  %1445 = vmatprep.subr.bf16.mxu1 %v2852_v9  ;;  %v2940_v8 = vld [vmem:[#allocation8 + $0x60] ss:$8 sps:$4 sm:$0xff]   ;;  %v2945_v9 = vld [vmem:[#allocation8 + $0x54] ss:$8 sps:$4 sm:$0xff]  }
  0xac   :  { %1432 = vmatprep.mubr.bf16.mxu0 %v3254_v48  ;;  %1475 = vmatprep.mubr.bf16.mxu1 %v3254_v48  ;;  %v2871_v48 = vld [vmem:[#allocation6 + $0xe0] ss:$48 sps:$4 sm:$0xff]  }
  0xae   :  { %1403 = vmatpush1.bf16.msra.mxu0 %v2847_v10  ;;  %1446 = vmatpush1.bf16.msra.mxu1 %v2850_v11  ;;  %v2943_v10 = vld [vmem:[#allocation8 + $0x50] ss:$8 sps:$4 sm:$0xff]   ;;  %v2948_v11 = vld [vmem:[#allocation8 + $0x44] ss:$8 sps:$4 sm:$0xff]  }
  0xaf   :  { %1404 = vmatprep.subr.bf16.mxu0 %v2855_v12  ;;  %1447 = vmatprep.subr.bf16.mxu1 %v2858_v13  ;;  %v2946_v12 = vld [vmem:[#allocation8 + $0x40] ss:$8 sps:$4 sm:$0xff]   ;;  %v2951_v13 = vld [vmem:[#allocation8 + $0x34] ss:$8 sps:$4 sm:$0xff]  }
  0xb2   :  { %1405 = vmatpush1.bf16.msra.mxu0 %v2853_v14  ;;  %1448 = vmatpush1.bf16.msra.mxu1 %v2856_v15  ;;  %v2987_v14 = vld [vmem:[#allocation8 + $0x174] ss:$8 sps:$4 sm:$0xff]   ;;  %v2985_v15 = vld [vmem:[#allocation8 + $0x170] ss:$8 sps:$4 sm:$0xff]  }
  0xb3   :  { %1406 = vmatprep.subr.bf16.mxu0 %v2861_v16  ;;  %1449 = vmatprep.subr.bf16.mxu1 %v2864_v17  ;;  %v2949_v16 = vld [vmem:[#allocation8 + $0x30] ss:$8 sps:$4 sm:$0xff]   ;;  %v2954_v17 = vld [vmem:[#allocation8 + $0x24] ss:$8 sps:$4 sm:$0xff]  }
  0xb6   :  { %1407 = vmatpush1.bf16.msra.mxu0 %v2859_v18  ;;  %1450 = vmatpush1.bf16.msra.mxu1 %v2862_v19  ;;  %v2991_v18 = vld [vmem:[#allocation8 + $0x160] ss:$8 sps:$4 sm:$0xff]  }
  0xb7   :  { %1408 = vmatprep.subr.bf16.mxu0 %v2867_v20  ;;  %1451 = vmatprep.subr.bf16.mxu1 %v2870_v21  ;;  %v2952_v19 = vld [vmem:[#allocation8 + $0x20] ss:$8 sps:$4 sm:$0xff]   ;;  %v2957_v20 = vld [vmem:[#allocation8 + $0x14] ss:$8 sps:$4 sm:$0xff]  }
  0xb8   :  { %v2999_v21 = vld [vmem:[#allocation8 + $0x154] ss:$8 sps:$4 sm:$0xff]  }
  0xba   :  { %1409 = vmatpush1.bf16.msra.mxu0 %v2865_v22  ;;  %1452 = vmatpush1.bf16.msra.mxu1 %v2868_v23  ;;  %v2997_v22 = vld [vmem:[#allocation8 + $0x150] ss:$8 sps:$4 sm:$0xff]  }
  0xbb   :  { %1410 = vmatprep.subr.bf16.mxu0 %v2873_v24  ;;  %1453 = vmatprep.subr.bf16.mxu1 %v2876_v25  ;;  %v2955_v23 = vld [vmem:[#allocation8 + $0x10] ss:$8 sps:$4 sm:$0xff]   ;;  %v2960_v24 = vld [vmem:[#allocation8 + $0x4] ss:$8 sps:$4 sm:$0xff]  }
  0xbc   :  { %v3005_v25 = vld [vmem:[#allocation8 + $0x144] ss:$8 sps:$4 sm:$0xff]  }
  0xbe   :  { %1411 = vmatpush1.bf16.msra.mxu0 %v2871_v48  ;;  %1454 = vmatpush1.bf16.msra.mxu1 %v2874_v26  ;;  %v3003_v48 = vld [vmem:[#allocation8 + $0x140] ss:$8 sps:$4 sm:$0xff]  }
  0xbf   :  { %1412 = vmatprep.subr.bf16.mxu0 %v2879_v27  ;;  %1455 = vmatprep.subr.bf16.mxu1 %v2882_v28  ;;  %v2958_v26 = vld [vmem:[#allocation8] ss:$8 sps:$4 sm:$0xff]   ;;  %v2963_v27 = vld [vmem:[#allocation8 + $0xf4] ss:$8 sps:$4 sm:$0xff]  }
  0xc0   :  { %v3011_v28 = vld [vmem:[#allocation8 + $0x134] ss:$8 sps:$4 sm:$0xff]  }
  0xc2   :  { %1413 = vmatpush1.bf16.msra.mxu0 %v2877_v29  ;;  %1456 = vmatpush1.bf16.msra.mxu1 %v2880_v30  ;;  %v3009_v29 = vld [vmem:[#allocation8 + $0x130] ss:$8 sps:$4 sm:$0xff]  }
  0xc3   :  { %1414 = vmatprep.subr.bf16.mxu0 %v2885_v31  ;;  %1457 = vmatprep.subr.bf16.mxu1 %v2888_v32  ;;  %v2961_v30 = vld [vmem:[#allocation8 + $0xf0] ss:$8 sps:$4 sm:$0xff]   ;;  %v2966_v31 = vld [vmem:[#allocation8 + $0xe4] ss:$8 sps:$4 sm:$0xff]  }
  0xc4   :  { %v3017_v32 = vld [vmem:[#allocation8 + $0x124] ss:$8 sps:$4 sm:$0xff]  }
  0xc6   :  { %1415 = vmatpush1.bf16.msra.mxu0 %v2883_v33  ;;  %1458 = vmatpush1.bf16.msra.mxu1 %v2886_v34  ;;  %v3015_v33 = vld [vmem:[#allocation8 + $0x120] ss:$8 sps:$4 sm:$0xff]  }
  0xc7   :  { %1416 = vmatprep.subr.bf16.mxu0 %v2891_v35  ;;  %1459 = vmatprep.subr.bf16.mxu1 %v2894_v36  ;;  %v2964_v34 = vld [vmem:[#allocation8 + $0xe0] ss:$8 sps:$4 sm:$0xff]   ;;  %v2969_v35 = vld [vmem:[#allocation8 + $0xd4] ss:$8 sps:$4 sm:$0xff]  }
  0xc8   :  { %v3023_v36 = vld [vmem:[#allocation8 + $0x114] ss:$8 sps:$4 sm:$0xff]  }
  0xca   :  { %1417 = vmatpush2.bf16.msra.mxu0 %v2889_v37  ;;  %1460 = vmatpush2.bf16.msra.mxu1 %v2892_v38  ;;  %v3021_v37 = vld [vmem:[#allocation8 + $0x110] ss:$8 sps:$4 sm:$0xff]  }
  0xcb   :  { %1418 = vmatprep.subr.bf16.mxu0 %v2897_v39  ;;  %1461 = vmatprep.subr.bf16.mxu1 %v2900_v40  ;;  %v2967_v38 = vld [vmem:[#allocation8 + $0xd0] ss:$8 sps:$4 sm:$0xff]   ;;  %v2972_v39 = vld [vmem:[#allocation8 + $0xc4] ss:$8 sps:$4 sm:$0xff]   ;;  %v3027_v40 = vld [vmem:[#allocation8 + $0x100] ss:$8 sps:$4 sm:$0xff]  }
  0xce   :  { %1419 = vmatpush2.bf16.msra.mxu0 %v2895_v41  ;;  %1462 = vmatpush2.bf16.msra.mxu1 %v2898_v42  ;;  %v3029_v41 = vld [vmem:[#allocation8 + $0x104] ss:$8 sps:$4 sm:$0xff]   ;;  %v2970_v42 = vld [vmem:[#allocation8 + $0xc0] ss:$8 sps:$4 sm:$0xff]  }
  0xcf   :  { %1420 = vmatprep.subr.bf16.mxu0 %v2903_v43  ;;  %1463 = vmatprep.subr.bf16.mxu1 %v2906_v44  ;;  %v3035_v43 = vld [vmem:[#allocation8 + $0x1f4] ss:$8 sps:$4 sm:$0xff]  }
  0xd0   :  { %v2975_v44 = vld [vmem:[#allocation8 + $0xb4] ss:$8 sps:$4 sm:$0xff]  }
  0xd2   :  { %1421 = vmatpush2.bf16.msra.mxu0 %v2901_v45  ;;  %1464 = vmatpush2.bf16.msra.mxu1 %v2904_v46  ;;  %v3033_v45 = vld [vmem:[#allocation8 + $0x1f0] ss:$8 sps:$4 sm:$0xff]  }
  0xd3   :  { %1422 = vmatprep.subr.bf16.mxu0 %v2909_v47  ;;  %1465 = vmatprep.subr.bf16.mxu1 %v2912_v49  ;;  %v2973_v46 = vld [vmem:[#allocation8 + $0xb0] ss:$8 sps:$4 sm:$0xff]   ;;  %v3041_v47 = vld [vmem:[#allocation8 + $0x1e4] ss:$8 sps:$4 sm:$0xff]  }
  0xd4   :  { %v2978_v49 = vld [vmem:[#allocation8 + $0xa4] ss:$8 sps:$4 sm:$0xff]  }
  0xd6   :  { %1423 = vmatpush2.bf16.msra.mxu0 %v2907_v50  ;;  %1466 = vmatpush2.bf16.msra.mxu1 %v2910_v51  ;;  %v3039_v50 = vld [vmem:[#allocation8 + $0x1e0] ss:$8 sps:$4 sm:$0xff]  }
  0xd7   :  { %1424 = vmatprep.subr.bf16.mxu0 %v2915_v52  ;;  %1467 = vmatprep.subr.bf16.mxu1 %v2918_v53  ;;  %v2976_v51 = vld [vmem:[#allocation8 + $0xa0] ss:$8 sps:$4 sm:$0xff]   ;;  %v3047_v52 = vld [vmem:[#allocation8 + $0x1d4] ss:$8 sps:$4 sm:$0xff]  }
  0xd8   :  { %v2981_v53 = vld [vmem:[#allocation8 + $0x94] ss:$8 sps:$4 sm:$0xff]  }
  0xda   :  { %1425 = vmatpush2.bf16.msra.mxu0 %v2913_v54  ;;  %1468 = vmatpush2.bf16.msra.mxu1 %v2916_v55  ;;  %v3045_v54 = vld [vmem:[#allocation8 + $0x1d0] ss:$8 sps:$4 sm:$0xff]  }
  0xdb   :  { %1426 = vmatprep.subr.bf16.mxu0 %v2921_v56  ;;  %1469 = vmatprep.subr.bf16.mxu1 %v2924_v57  ;;  %v2979_v55 = vld [vmem:[#allocation8 + $0x90] ss:$8 sps:$4 sm:$0xff]   ;;  %v3053_v56 = vld [vmem:[#allocation8 + $0x1c4] ss:$8 sps:$4 sm:$0xff]  }
  0xdc   :  { %v2984_v57 = vld [vmem:[#allocation8 + $0x84] ss:$8 sps:$4 sm:$0xff]  }
  0xde   :  { %1427 = vmatpush2.bf16.msra.mxu0 %v2919_v58  ;;  %1470 = vmatpush2.bf16.msra.mxu1 %v2922_v59  ;;  %v3051_v58 = vld [vmem:[#allocation8 + $0x1c0] ss:$8 sps:$4 sm:$0xff]  }
  0xdf   :  { %1428 = vmatprep.subr.bf16.mxu0 %v2927_v60  ;;  %1471 = vmatprep.subr.bf16.mxu1 %v2930_v61  ;;  %v2982_v59 = vld [vmem:[#allocation8 + $0x80] ss:$8 sps:$4 sm:$0xff]   ;;  %v3059_v60 = vld [vmem:[#allocation8 + $0x1b4] ss:$8 sps:$4 sm:$0xff]  }
  0xe0   :  { %v2990_v61 = vld [vmem:[#allocation8 + $0x274] ss:$8 sps:$4 sm:$0xff]  }
  0xe2   :  { %1429 = vmatpush2.bf16.msra.mxu0 %v2925_v62  ;;  %1472 = vmatpush2.bf16.msra.mxu1 %v2928_v63  ;;  %v3057_v62 = vld [vmem:[#allocation8 + $0x1b0] ss:$8 sps:$4 sm:$0xff]   ;;  %v3065_v63 = vld [vmem:[#allocation8 + $0x1a4] ss:$8 sps:$4 sm:$0xff]  }
  0xe3   :  { %1430 = vmatprep.subr.bf16.mxu0 %v2933_v0  ;;  %1473 = vmatprep.subr.bf16.mxu1 %v2936_v1  ;;  %v3063_v0 = vld [vmem:[#allocation8 + $0x1a0] ss:$8 sps:$4 sm:$0xff]   ;;  %v3071_v1 = vld [vmem:[#allocation8 + $0x194] ss:$8 sps:$4 sm:$0xff]  }
  0xe6   :  { %1431 = vmatpush2.bf16.msra.mxu0 %v2931_v2  ;;  %1474 = vmatpush2.bf16.msra.mxu1 %v2934_v4  ;;  %v3069_v2 = vld [vmem:[#allocation8 + $0x190] ss:$8 sps:$4 sm:$0xff]   ;;  %v3077_v4 = vld [vmem:[#allocation8 + $0x184] ss:$8 sps:$4 sm:$0xff]  }
  0xe7   :  { %2168 = vmatprep.subr.bf16.mxu0 %v2939_v5  ;;  %2211 = vmatprep.subr.bf16.mxu1 %v2987_v14  ;;  %v3075_v5 = vld [vmem:[#allocation8 + $0x180] ss:$8 sps:$4 sm:$0xff]  }
  0xe9   :  { %1433 = vmatmul.mubr.bf16.vlgmr.msra.gmra.mxu0 %v3258_v3  ;;  %1476 = vmatmul.mubr.bf16.vlgmr.msra.gmra.mxu1 %v3258_v3  ;;  %v2993_v3 = vld [vmem:[#allocation8 + $0x164] ss:$8 sps:$4 sm:$0xff]  }
  0xea   :  { %2169 = vmatpush1.bf16.msra.mxu0 %v2937_v6  ;;  %2212 = vmatpush1.bf16.msra.mxu1 %v2985_v15 }
  0xeb   :  { %2170 = vmatprep.subr.bf16.mxu0 %v2942_v7  ;;  %2213 = vmatprep.subr.bf16.mxu1 %v2993_v3 }
  0xee   :  { %2171 = vmatpush1.bf16.msra.mxu0 %v2940_v8  ;;  %2214 = vmatpush1.bf16.msra.mxu1 %v2991_v18 }
  0xef   :  { %2172 = vmatprep.subr.bf16.mxu0 %v2945_v9  ;;  %2215 = vmatprep.subr.bf16.mxu1 %v2999_v21 }
  0xf2   :  { %2173 = vmatpush1.bf16.msra.mxu0 %v2943_v10  ;;  %2216 = vmatpush1.bf16.msra.mxu1 %v2997_v22 }
  0xf3   :  { %2174 = vmatprep.subr.bf16.mxu0 %v2948_v11  ;;  %2217 = vmatprep.subr.bf16.mxu1 %v3005_v25 }
  0xf6   :  { %2175 = vmatpush1.bf16.msra.mxu0 %v2946_v12  ;;  %2218 = vmatpush1.bf16.msra.mxu1 %v3003_v48 }
  0xf7   :  { %2176 = vmatprep.subr.bf16.mxu0 %v2951_v13  ;;  %2219 = vmatprep.subr.bf16.mxu1 %v3011_v28 }
  0xfa   :  { %2177 = vmatpush1.bf16.msra.mxu0 %v2949_v16  ;;  %2220 = vmatpush1.bf16.msra.mxu1 %v3009_v29 }
  0xfb   :  { %2178 = vmatprep.subr.bf16.mxu0 %v2954_v17  ;;  %2221 = vmatprep.subr.bf16.mxu1 %v3017_v32 }
  0xfe   :  { %2179 = vmatpush1.bf16.msra.mxu0 %v2952_v19  ;;  %2222 = vmatpush1.bf16.msra.mxu1 %v3015_v33 }
  0xff   :  { %2180 = vmatprep.subr.bf16.mxu0 %v2957_v20  ;;  %2223 = vmatprep.subr.bf16.mxu1 %v3023_v36 }
 0x102   :  { %2181 = vmatpush1.bf16.msra.mxu0 %v2955_v23  ;;  %2224 = vmatpush1.bf16.msra.mxu1 %v3021_v37 }
 0x103   :  { %2182 = vmatprep.subr.bf16.mxu0 %v2960_v24  ;;  %2225 = vmatprep.subr.bf16.mxu1 %v3029_v41  ;;  %v2988_v41 = vld [vmem:[#allocation8 + $0x270] ss:$8 sps:$4 sm:$0xff]  }
 0x106   :  { %2183 = vmatpush1.bf16.msra.mxu0 %v2958_v26  ;;  %2226 = vmatpush1.bf16.msra.mxu1 %v3027_v40 }
 0x107   :  { %2184 = vmatprep.subr.bf16.mxu0 %v2963_v27  ;;  %2227 = vmatprep.subr.bf16.mxu1 %v3035_v43  ;;  %v2996_v43 = vld [vmem:[#allocation8 + $0x264] ss:$8 sps:$4 sm:$0xff]  }
 0x10a   :  { %2185 = vmatpush2.bf16.msra.mxu0 %v2961_v30  ;;  %2228 = vmatpush2.bf16.msra.mxu1 %v3033_v45 }
 0x10b   :  { %2186 = vmatprep.subr.bf16.mxu0 %v2966_v31  ;;  %2229 = vmatprep.subr.bf16.mxu1 %v3041_v47  ;;  %v3000_v47 = vld [vmem:[#allocation8 + $0x250] ss:$8 sps:$4 sm:$0xff]  }
 0x10e   :  { %2187 = vmatpush2.bf16.msra.mxu0 %v2964_v34  ;;  %2230 = vmatpush2.bf16.msra.mxu1 %v3039_v50  ;;  %v3008_v50 = vld [vmem:[#allocation8 + $0x244] ss:$8 sps:$4 sm:$0xff]  }
 0x10f   :  { %2188 = vmatprep.subr.bf16.mxu0 %v2969_v35  ;;  %2231 = vmatprep.subr.bf16.mxu1 %v3047_v52 }
 0x112   :  { %2189 = vmatpush2.bf16.msra.mxu0 %v2967_v38  ;;  %2232 = vmatpush2.bf16.msra.mxu1 %v3045_v54 }
 0x113   :  { %2190 = vmatprep.subr.bf16.mxu0 %v2972_v39  ;;  %2233 = vmatprep.subr.bf16.mxu1 %v3053_v56 }
 0x116   :  { %2191 = vmatpush2.bf16.msra.mxu0 %v2970_v42  ;;  %2234 = vmatpush2.bf16.msra.mxu1 %v3051_v58 }
 0x117   :  { %2192 = vmatprep.subr.bf16.mxu0 %v2975_v44  ;;  %2235 = vmatprep.subr.bf16.mxu1 %v3059_v60  ;;  %v2994_v44 = vld [vmem:[#allocation8 + $0x260] ss:$8 sps:$4 sm:$0xff]   ;;  %v3020_v60 = vld [vmem:[#allocation8 + $0x224] ss:$8 sps:$4 sm:$0xff]  }
 0x11a   :  { %2193 = vmatpush2.bf16.msra.mxu0 %v2973_v46  ;;  %2236 = vmatpush2.bf16.msra.mxu1 %v3057_v62  ;;  %v3002_v46 = vld [vmem:[#allocation8 + $0x254] ss:$8 sps:$4 sm:$0xff]  }
 0x11b   :  { %2194 = vmatprep.subr.bf16.mxu0 %v2978_v49  ;;  %2237 = vmatprep.subr.bf16.mxu1 %v3065_v63 }
 0x11e   :  { %2195 = vmatpush2.bf16.msra.mxu0 %v2976_v51  ;;  %2238 = vmatpush2.bf16.msra.mxu1 %v3063_v0  ;;  %v3006_v51 = vld [vmem:[#allocation8 + $0x240] ss:$8 sps:$4 sm:$0xff]  }
 0x11f   :  { %2196 = vmatprep.subr.bf16.mxu0 %v2981_v53  ;;  %2239 = vmatprep.subr.bf16.mxu1 %v3071_v1  ;;  %v3014_v53 = vld [vmem:[#allocation8 + $0x234] ss:$8 sps:$4 sm:$0xff]   ;;  %v3018_v0 = vld [vmem:[#allocation8 + $0x220] ss:$8 sps:$4 sm:$0xff]  }
 0x122   :  { %2197 = vmatpush2.bf16.msra.mxu0 %v2979_v55  ;;  %2240 = vmatpush2.bf16.msra.mxu1 %v3069_v2  ;;  %v3026_v2 = vld [vmem:[#allocation8 + $0x214] ss:$8 sps:$4 sm:$0xff]  }
 0x123   :  { %2198 = vmatprep.subr.bf16.mxu0 %v2984_v57  ;;  %2241 = vmatprep.subr.bf16.mxu1 %v3077_v4  ;;  %v3012_v57 = vld [vmem:[#allocation8 + $0x230] ss:$8 sps:$4 sm:$0xff]  }
 0x124   :  { %v3024_v4 = vld [vmem:[#allocation8 + $0x210] ss:$8 sps:$4 sm:$0xff]  }
 0x126   :  { %2199 = vmatpush2.bf16.msra.mxu0 %v2982_v59  ;;  %2242 = vmatpush2.bf16.msra.mxu1 %v3075_v5  ;;  %v3032_v5 = vld [vmem:[#allocation8 + $0x204] ss:$8 sps:$4 sm:$0xff]  }
 0x127   :  { %2254 = vmatprep.subr.bf16.mxu0 %v2990_v61 }
 0x129   :  { %v1262_v6 = vpop.f32.mrf.mxu0  ;;  %v3270_v21 = vpop.f32.mrf.mxu1 }
 0x12a   :  { %v2528_v13 = vmul.f32 -1.442695, %v1262_v6  ;;  %v2530_v54 = vmul.f32 -1.442695, %v3270_v21 }
 0x12b   :  { %v1264_v7 = vpop.f32.mrf.mxu0  ;;  %v3272_v22 = vpop.f32.mrf.mxu1 }
 0x12c   :  { %v2529_v10 = vmul.f32 -1.442695, %v1264_v7  ;;  %v2531_v55 = vmul.f32 -1.442695, %v3272_v22 }
 0x12d   :  { %v1266_v8 = vpop.f32.mrf.mxu0  ;;  %v3274_v23 = vpop.f32.mrf.mxu1 }
 0x12e   :  { %v2534_v11 = vmul.f32 -1.442695, %v1266_v8  ;;  %3081 = vpow2.f32 %v2529_v10  ;;  %v2536_v56 = vmul.f32 -1.442695, %v3274_v23  ;;  %v3036_v10 = vld [vmem:[#allocation8 + $0x2f0] ss:$8 sps:$4 sm:$0xff]  }
 0x12f   :  { %v1268_v9 = vpop.f32.mrf.mxu0  ;;  %v3276_v24 = vpop.f32.mrf.mxu1 }
 0x130   :  { %v2535_v12 = vmul.f32 -1.442695, %v1268_v9  ;;  %3083 = vpow2.f32 %v2534_v11  ;;  %v2537_v58 = vmul.f32 -1.442695, %v3276_v24 }
 0x132   :  { %3085 = vpow2.f32 %v2535_v12  ;;  %v3044_v12 = vld [vmem:[#allocation8 + $0x2e4] ss:$8 sps:$4 sm:$0xff]  }
 0x133   :  { %3087 = vpow2.f32 %v2528_v13 }
 0x13b   :  { %v3082_v14 = vpop.eup %3081 }
 0x13c   :  { %v1523_v3 = vadd.f32 1.0, %v3082_v14 }
 0x13d   :  { %v3084_v15 = vpop.eup %3083 }
 0x13e   :  { %v1528_v18 = vadd.f32 1.0, %v3084_v15  ;;  %3089 = vrcp.f32 %v1523_v3 }
 0x13f   :  { %v3086_v16 = vpop.eup %3085 }
 0x140   :  { %v3088_v17 = vpop.eup %3087  ;;  %v1529_v19 = vadd.f32 1.0, %v3086_v16  ;;  %3091 = vrcp.f32 %v1528_v18  ;;  %v3042_v18 = vld [vmem:[#allocation8 + $0x2e0] ss:$8 sps:$4 sm:$0xff]  }
 0x141   :  { %v1522_v20 = vadd.f32 1.0, %v3088_v17 }
 0x142   :  { %3093 = vrcp.f32 %v1529_v19 }
 0x143   :  { %3095 = vrcp.f32 %v1522_v20 }
 0x144   :  { %3097 = vpow2.f32 %v2530_v54  ;;  %v3080_v54 = vld [vmem:[#allocation8 + $0x284] ss:$8 sps:$4 sm:$0xff]  }
 0x145   :  { %3099 = vpow2.f32 %v2531_v55 }
 0x146   :  { %3101 = vpow2.f32 %v2536_v56 }
 0x147   :  { %3103 = vpow2.f32 %v2537_v58 }
 0x14b   :  { %v3090_v25 = vpop.eup %3089 }
 0x14c   :  { %v1559_v32 = vmul.f32 %v3090_v25, %v1264_v7  ;;  %v3038_v7 = vld [vmem:[#allocation8 + $0x2f4] ss:$8 sps:$4 sm:$0xff]  }
 0x14d   :  { %v3092_v26 = vpop.eup %3091  ;;  %v3050_v25 = vld [vmem:[#allocation8 + $0x2d4] ss:$8 sps:$4 sm:$0xff]  }
 0x14e   :  { %v1564_v30 = vmul.f32 %v3092_v26, %v1266_v8 }
 0x14f   :  { %v3094_v27 = vpop.eup %3093 }
 0x150   :  { %v3096_v29 = vpop.eup %3095  ;;  %v1565_v33 = vmul.f32 %v3094_v27, %v1268_v9 }
 0x151   :  { %v1558_v34 = vmul.f32 %v3096_v29, %v1262_v6  ;;  %v3030_v6 = vld [vmem:[#allocation8 + $0x200] ss:$8 sps:$4 sm:$0xff]   ;;  %v3098_v8 = vpop.eup %3097  ;;  %v3048_v29 = vld [vmem:[#allocation8 + $0x2d0] ss:$8 sps:$4 sm:$0xff]  }
 0x152   :  { %v3100_v9 = vpop.eup %3099  ;;  %v1524_v14 = vadd.f32 1.0, %v3098_v8 }
 0x153   :  { %v3102_v11 = vpop.eup %3101  ;;  %v1525_v16 = vadd.f32 1.0, %v3100_v9 }
 0x154   :  { %v3104_v13 = vpop.eup %3103  ;;  %v1530_v3 = vadd.f32 1.0, %v3102_v11 }
 0x155   :  { %v1531_v20 = vadd.f32 1.0, %v3104_v13 }
 0x169   :  { %v1391_v48 = vpop.f32.mrf.mxu1  ;;  %v3278_v45 = vpop.f32.mrf.mxu0 }
 0x16a   :  { %v1570_v39 = vmul.f32 %v1558_v34, %v1391_v48  ;;  %v2532_v1 = vmul.f32 -1.442695, %v3278_v45  ;;  %v3060_v34 = vld [vmem:[#allocation8 + $0x2b0] ss:$8 sps:$4 sm:$0xff]  }
 0x16b   :  { %v1393_v28 = vpop.f32.mrf.mxu1  ;;  %v3280_v49 = vpop.f32.mrf.mxu0 }
 0x16c   :  { %v1571_v37 = vmul.f32 %v1559_v32, %v1393_v28  ;;  %v2533_v61 = vmul.f32 -1.442695, %v3280_v49  ;;  %v3054_v32 = vld [vmem:[#allocation8 + $0x2c0] ss:$8 sps:$4 sm:$0xff]  }
 0x16d   :  { %v1395_v31 = vpop.f32.mrf.mxu1  ;;  %v3282_v52 = vpop.f32.mrf.mxu0 }
 0x16e   :  { %v1576_v35 = vmul.f32 %v1564_v30, %v1395_v31  ;;  %v2538_v62 = vmul.f32 -1.442695, %v3282_v52  ;;  %3105 = vpow2.f32 %v2533_v61  ;;  %v3056_v31 = vld [vmem:[#allocation8 + $0x2c4] ss:$8 sps:$4 sm:$0xff]  }
 0x16f   :  { %v1397_v36 = vpop.f32.mrf.mxu1  ;;  %v3288_v59 = vpop.f32.mrf.mxu0 }
 0x170   :  { %v1577_v38 = vmul.f32 %v1565_v33, %v1397_v36  ;;  %v1582_v42 = vpack.c.bf16 %v1576_v35, %v1570_v39  ;;  %v2539_v63 = vmul.f32 -1.442695, %v3288_v59  ;;  %3107 = vpow2.f32 %v2538_v62  ;;  %v3062_v33 = vld [vmem:[#allocation8 + $0x2b4] ss:$8 sps:$4 sm:$0xff]   ;;  %v3068_v35 = vld [vmem:[#allocation8 + $0x2a4] ss:$8 sps:$4 sm:$0xff]  }
 0x172   :  { %v1583_v40 = vpack.c.bf16 %v1577_v38, %v1571_v37  ;;  %3109 = vpow2.f32 %v2539_v63  ;;  %v3066_v38 = vld [vmem:[#allocation8 + $0x2a0] ss:$8 sps:$4 sm:$0xff]  }
 0x173   :  { %3111 = vpow2.f32 %v2532_v1 }
 0x174   :  { %2200 = vmatprep.mubr.bf16.mxu0 %v1583_v40  ;;  %3113 = vrcp.f32 %v1524_v14  ;;  %v3074_v40 = vld [vmem:[#allocation8 + $0x294] ss:$8 sps:$4 sm:$0xff]  }
 0x175   :  { %2201 = vmatmul.mubr.bf16.vlgmr.msra.gmra.mxu0 %v1582_v42  ;;  %3115 = vrcp.f32 %v1525_v16 }
 0x176   :  { %2255 = vmatpush1.bf16.msra.mxu0 %v2988_v41  ;;  %3117 = vrcp.f32 %v1530_v3 }
 0x177   :  { %2256 = vmatprep.subr.bf16.mxu0 %v2996_v43  ;;  %3119 = vrcp.f32 %v1531_v20 }
 0x17a   :  { %2257 = vmatpush1.bf16.msra.mxu0 %v2994_v44 }
 0x17b   :  { %2258 = vmatprep.subr.bf16.mxu0 %v3002_v46  ;;  %v3106_v15 = vpop.eup %3105 }
 0x17c   :  { %v1527_v26 = vadd.f32 1.0, %v3106_v15 }
 0x17d   :  { %v3108_v17 = vpop.eup %3107 }
 0x17e   :  { %2259 = vmatpush1.bf16.msra.mxu0 %v3000_v47  ;;  %v1532_v27 = vadd.f32 1.0, %v3108_v17  ;;  %3121 = vrcp.f32 %v1527_v26  ;;  %v3072_v47 = vld [vmem:[#allocation8 + $0x290] ss:$8 sps:$4 sm:$0xff]  }
 0x17f   :  { %2260 = vmatprep.subr.bf16.mxu0 %v3008_v50  ;;  %v3110_v19 = vpop.eup %3109 }
 0x180   :  { %v3112_v48 = vpop.eup %3111  ;;  %v1533_v28 = vadd.f32 1.0, %v3110_v19  ;;  %3123 = vrcp.f32 %v1532_v27 }
 0x181   :  { %v1526_v30 = vadd.f32 1.0, %v3112_v48  ;;  %v3114_v36 = vpop.eup %3113 }
 0x182   :  { %2261 = vmatpush1.bf16.msra.mxu0 %v3006_v51  ;;  %3125 = vrcp.f32 %v1533_v28  ;;  %v3116_v37 = vpop.eup %3115  ;;  %v1560_v56 = vmul.f32 %v3114_v36, %v3270_v21 }
 0x183   :  { %2262 = vmatprep.subr.bf16.mxu0 %v3014_v53  ;;  %3127 = vrcp.f32 %v1526_v30  ;;  %v3118_v39 = vpop.eup %3117  ;;  %v1561_v58 = vmul.f32 %v3116_v37, %v3272_v22 }
 0x184   :  { %v3120_v41 = vpop.eup %3119 }
 0x186   :  { %2263 = vmatpush1.bf16.msra.mxu0 %v3012_v57  ;;  %v1566_v57 = vmul.f32 %v3118_v39, %v3274_v23 }
 0x187   :  { %2264 = vmatprep.subr.bf16.mxu0 %v3020_v60  ;;  %v1567_v60 = vmul.f32 %v3120_v41, %v3276_v24 }
 0x18a   :  { %2265 = vmatpush1.bf16.msra.mxu0 %v3018_v0 }
 0x18b   :  { %2266 = vmatprep.subr.bf16.mxu0 %v3026_v2  ;;  %v3122_v42 = vpop.eup %3121 }
 0x18c   :  { %v1563_v0 = vmul.f32 %v3122_v42, %v3280_v49 }
 0x18d   :  { %v3124_v46 = vpop.eup %3123 }
 0x18e   :  { %2267 = vmatpush1.bf16.msra.mxu0 %v3024_v4  ;;  %v1568_v61 = vmul.f32 %v3124_v46, %v3282_v52 }
 0x18f   :  { %2268 = vmatprep.subr.bf16.mxu0 %v3032_v5  ;;  %v3126_v50 = vpop.eup %3125  ;;  %v3078_v5 = vld [vmem:[#allocation8 + $0x280] ss:$8 sps:$4 sm:$0xff]  }
 0x190   :  { %v3128_v55 = vpop.eup %3127  ;;  %v1569_v1 = vmul.f32 %v3126_v50, %v3288_v59 }
 0x191   :  { %v1562_v21 = vmul.f32 %v3128_v55, %v3278_v45 }
 0x192   :  { %2269 = vmatpush1.bf16.msra.mxu0 %v3030_v6 }
 0x193   :  { %2270 = vmatprep.subr.bf16.mxu0 %v3038_v7 }
 0x196   :  { %2271 = vmatpush2.bf16.msra.mxu0 %v3036_v10 }
 0x197   :  { %2272 = vmatprep.subr.bf16.mxu0 %v3044_v12 }
 0x19a   :  { %2273 = vmatpush2.bf16.msra.mxu0 %v3042_v18 }
 0x19b   :  { %2274 = vmatprep.subr.bf16.mxu0 %v3050_v25 }
 0x19e   :  { %2275 = vmatpush2.bf16.msra.mxu0 %v3048_v29 }
 0x19f   :  { %2276 = vmatprep.subr.bf16.mxu0 %v3056_v31 }
 0x1a2   :  { %2277 = vmatpush2.bf16.msra.mxu0 %v3054_v32 }
 0x1a3   :  { %2278 = vmatprep.subr.bf16.mxu0 %v3062_v33 }
 0x1a6   :  { %2279 = vmatpush2.bf16.msra.mxu0 %v3060_v34 }
 0x1a7   :  { %2280 = vmatprep.subr.bf16.mxu0 %v3068_v35 }
 0x1a9   :  { %v1434_v43 = vpop.f32.mrf.mxu0  ;;  %v1477_v44 = vpop.f32.mrf.mxu1 }
 0x1aa   :  { %2281 = vmatpush2.bf16.msra.mxu0 %v3066_v38  ;;  %v1572_v2 = vmul.f32 %v1560_v56, %v1434_v43  ;;  %v1574_v10 = vmul.f32 %v1562_v21, %v1477_v44 }
 0x1ab   :  { %v1436_v51 = vpop.f32.mrf.mxu0  ;;  %v1479_v53 = vpop.f32.mrf.mxu1  ;;  %2282 = vmatprep.subr.bf16.mxu0 %v3074_v40 }
 0x1ac   :  { %v1573_v6 = vmul.f32 %v1561_v58, %v1436_v51  ;;  %v1575_v24 = vmul.f32 %v1563_v0, %v1479_v53 }
 0x1ad   :  { %v1438_v62 = vpop.f32.mrf.mxu0  ;;  %v1481_v63 = vpop.f32.mrf.mxu1 }
 0x1ae   :  { %v1578_v4 = vmul.f32 %v1566_v57, %v1438_v62  ;;  %2283 = vmatpush2.bf16.msra.mxu0 %v3072_v47  ;;  %v1580_v23 = vmul.f32 %v1568_v61, %v1481_v63 }
 0x1af   :  { %v1440_v7 = vpop.f32.mrf.mxu0  ;;  %v1483_v22 = vpop.f32.mrf.mxu1  ;;  %2284 = vmatprep.subr.bf16.mxu0 %v3080_v54 }
 0x1b0   :  { %v1584_v8 = vpack.c.bf16 %v1578_v4, %v1572_v2  ;;  %v1579_v52 = vmul.f32 %v1567_v60, %v1440_v7  ;;  %v1581_v9 = vmul.f32 %v1569_v1, %v1483_v22  ;;  %v1586_v59 = vpack.c.bf16 %v1580_v23, %v1574_v10 }
 0x1b2   :  { %v1585_v11 = vpack.c.bf16 %v1579_v52, %v1573_v6  ;;  %v1587_v49 = vpack.c.bf16 %v1581_v9, %v1575_v24  ;;  %2285 = vmatpush2.bf16.msra.mxu0 %v3078_v5 }
 0x1b4   :  { %2243 = vmatprep.mubr.bf16.mxu1 %v1585_v11  ;;  %2286 = vmatprep.mubr.bf16.mxu0 %v1587_v49 }
 0x1b5   :  { %2244 = vmatmul.mubr.bf16.vlgmr.msra.gmra.mxu1 %v1584_v8  ;;  %2287 = vmatmul.mubr.bf16.vlgmr.msra.gmra.mxu0 %v1586_v59 }
 0x235   :  { %v2202_v12 = vpop.f32.mrf.mxu0 }
 0x237   :  { %v2204_v45 = vpop.f32.mrf.mxu0 }
 0x239   :  { %v2206_v13 = vpop.f32.mrf.mxu0 }
 0x23b   :  { %v2208_v14 = vpop.f32.mrf.mxu0 }
 0x275   :  { %v2245_v15 = vpop.f32.mrf.mxu1  ;;  %v2288_v16 = vpop.f32.mrf.mxu0 }
 0x276   :  { %v2246_v17 = vadd.f32 %v2245_v15, %v2202_v12 }
 0x277   :  { %v2247_v3 = vpop.f32.mrf.mxu1  ;;  %v2290_v18 = vpop.f32.mrf.mxu0 }
 0x278   :  { %v2289_v19 = vadd.f32 %v2288_v16, %v2246_v17  ;;  %v2248_v20 = vadd.f32 %v2247_v3, %v2204_v45 }
 0x279   :  { %v2249_v25 = vpop.f32.mrf.mxu1  ;;  %v2292_v48 = vpop.f32.mrf.mxu0 }
 0x27a   :  { %2312 = vst [vmem:[#allocation9] sm:$0xff] %v2289_v19  ;;  %v2291_v26 = vadd.f32 %v2290_v18, %v2248_v20  ;;  %v2250_v27 = vadd.f32 %v2249_v25, %v2206_v13 }
 0x27b   :  { %v2251_v28 = vpop.f32.mrf.mxu1  ;;  %v2294_v31 = vpop.f32.mrf.mxu0 }
 0x27c   :  { %2313 = vst [vmem:[#allocation9 + $0x8] sm:$0xff] %v2291_v26  ;;  %v2293_v29 = vadd.f32 %v2292_v48, %v2250_v27  ;;  %v2252_v30 = vadd.f32 %v2251_v28, %v2208_v14 }
 0x27e   :  { %2314 = vst [vmem:[#allocation9 + $0x10] sm:$0xff] %v2293_v29  ;;  %v2295_v32 = vadd.f32 %v2294_v31, %v2252_v30 }
 0x280   :  { %2315 = vst [vmem:[#allocation9 + $0x18] sm:$0xff] %v2295_v32 }
 0x281   :  { %3200 = shalt.err (!%p3197_p5)
}
 0x282   :  { %s3223_s4 = smov 256   ;;  %s3224_s5 = smov 16  }
 0x283   :  { %2327 = dma.vmem_to_hbm [thread:$0]  %s2322_s2, 512, %s3308_s3, [#allocation5], %s3223_s4, %s3223_s4, %s3224_s5  }
 0x284   :  { %3213 = dma.done.wait [#allocation5], 512  }
 0x285   :  { %3214 = vsyncadd [#allocation5], 4294966784 }
 0x286   :  { %2331 = vsyncpa [#allocation4], 1 }
 0x287   :  { %2332 = vsyncpa [#allocation7], 1 }
 0x288   :  { %2333 = vsyncpa [#allocation5], 1 }

</bundles_post_ra>
